<compile_context>
chip_gen: v5e
topology: v5e:2x2
jax: 0.10.0
libtpu: 0.0.40
codegen_flags: <defaults>
</compile_context>

<pallas_src>
import functools

import jax
import jax.numpy as jnp
from jax import lax
from jax.experimental import pallas as pl
from jax.experimental.pallas import tpu as pltpu

LANE = 128
BCHUNK = 8          # batch elements folded per grid step (keeps every matmul M % 8 == 0)


def _round_up(x, m):
    return (x + m - 1) // m * m


# ----------------------------------------------------------------------------
# Fused Pallas kernel: one grid step == BCHUNK batch elements, fully VMEM-resident.
# ----------------------------------------------------------------------------
def _fused_forward_kernel(x_ref, *refs, fws, t_seq, p0, bchunk, c_pad, n_pad):
    nb = len(fws) - 1
    w0, s0, b0 = refs[0], refs[1], refs[2]
    block_refs = refs[3:3 + 6 * nb]
    ws, bs = refs[3 + 6 * nb], refs[4 + 6 * nb]
    o_ref = refs[5 + 6 * nb]
    h_ref = refs[6 + 6 * nb]          # (rows, c_pad) f32 scratch: layer activations
    slab_ref = refs[7 + 6 * nb]       # (rows, fw_max*c_pad) bf16 scratch: im2col slab

    def bn_relu(acc, s_ref, b_ref):
        return jnp.maximum(acc * s_ref[...] + b_ref[...], 0.0)

    # ---- expand_conv (stride 1, no bias) + expand_bn + ReLU: ONE matmul -------------
    # Input is already im2col'ed + tap-packed (K = fw0*cin real lanes, bf16) in HBM.
    h = bn_relu(jnp.dot(x_ref[...], w0[...], preferred_element_type=jnp.float32),
                s0, b0)                               # (bchunk*p0, c_pad) f32
    have = p0                                         # rows per batch element in `h`

    # ---- residual blocks: strided conv (k=fw, stride=fw) + 1x1 conv, BN+ReLU --------
    for i in range(nb):
        w1, s1, b1, w2, s2, b2 = block_refs[6 * i:6 * i + 6]
        fw, t_new = fws[i + 1], t_seq[i + 1]
        need = fw * t_new                             # rows/batch this block consumes
        m = bchunk * t_new                            # matmul M for this block

        # Stash the block input with per-batch pitch `need` (gap-free), so every tap is
        # ONE strided read covering all folded batch elements at once.
        if have == need:
            h_ref[0:bchunk * need, :] = h
        else:
            for b in range(bchunk):                   # drop unused trailing rows/batch
                h_ref[b * need:(b + 1) * need, :] = h[b * have:b * have + need, :]

        # Build the bf16 im2col slab: strided tap reads + lane-aligned (k*128) stores.
        res = None
        for k in range(fw):
            tap = h_ref[pl.ds(k, m, stride=fw), :]    # (m, c_pad) f32
            if k == fw // 2:
                res = tap                             # residual = center tap, kept f32
            slab_ref[0:m, k * c_pad:(k + 1) * c_pad] = tap.astype(jnp.bfloat16)

        y = jnp.dot(slab_ref[0:m, 0:fw * c_pad], w1[...],
                    preferred_element_type=jnp.float32)      # single K=fw*c_pad matmul
        y = bn_relu(y, s1, b1)
        y = jnp.dot(y.astype(jnp.bfloat16), w2[...],
                    preferred_element_type=jnp.float32)
        y = bn_relu(y, s2, b2)
        h = res + y                                   # (m, c_pad) f32, pitch t_new
        have = t_new

    # ---- per-batch temporal mean (tiny MXU matmul) + shrink 1x1 conv + bias ---------
    m_last = bchunk * have
    ridx = lax.broadcasted_iota(jnp.int32, (bchunk, m_last), 1)
    lo = lax.broadcasted_iota(jnp.int32, (bchunk, m_last), 0) * have
    avg = jnp.where((ridx >= lo) & (ridx < lo + have),
                    jnp.float32(1.0 / have), jnp.float32(0.0))
    mean_h = jnp.dot(avg, h, preferred_element_type=jnp.float32)     # (bchunk, c_pad)
    out = jnp.dot(mean_h.astype(jnp.bfloat16), ws[...],
                  preferred_element_type=jnp.float32) + bs[...]      # (bchunk, n_pad)
    o_ref[...] = out


# ----------------------------------------------------------------------------
# Wrapper
# ----------------------------------------------------------------------------
def patch_embed_forward(arrays, x, *, filter_widths, n_landmarks, in_chans,
                        embed_dim, channels, bchunk=BCHUNK):
    B, T, J, F = x.shape
    assert J == n_landmarks and F == in_chans
    cin = J * F
    fws = tuple(filter_widths)
    c_pad = _round_up(channels, LANE)
    shrink_out = n_landmarks * embed_dim
    n_pad = _round_up(shrink_out, LANE)
    k0_pad = _round_up(fws[0] * cin, LANE)

    # Static temporal sizes through the network.
    # TODO(synk): expand_conv uses stride 1 here (TemporalModel-style expand); the
    # TemporalModelOptimized1f subclass would use stride = filter_widths[0].
    t_seq = [T - fws[0] + 1]
    for fw in fws[1:]:
        t_cur = t_seq[-1]
        t_new = (t_cur - fw) // fw + 1
        # residual slice h[fw//2::fw] must have exactly t_new entries
        assert (t_cur - fw // 2 + fw - 1) // fw == t_new
        t_seq.append(t_new)
    t_seq = tuple(t_seq)
    nb = len(fws) - 1
    # Rows/batch the first consumer of the expand output actually needs.
    p0 = fws[1] * t_seq[1] if nb > 0 else t_seq[0]

    # ---- wrapper-side im2col of the expand conv (bf16, dense tap-packed K) ----------
    xf = x.reshape(B, T, cin).astype(jnp.float32)
    xcol = jnp.concatenate([xf[:, k:k + p0, :] for k in range(fws[0])], axis=-1)
    xcol = jnp.pad(xcol, ((0, 0), (0, 0), (0, k0_pad - fws[0] * cin)))
    nsteps = pl.cdiv(B, bchunk)
    if nsteps * bchunk != B:                          # pad batch to whole chunks
        xcol = jnp.pad(xcol, ((0, nsteps * bchunk - B), (0, 0), (0, 0)))
    xcol = xcol.reshape(nsteps, bchunk * p0, k0_pad).astype(jnp.bfloat16)

    if nb > 0:
        slab_rows = _round_up(bchunk * max(t_seq[1:]), 8)
        slab_cols = max(fws[1:]) * c_pad
    else:
        slab_rows, slab_cols = 8, LANE
    h_rows = _round_up(bchunk * p0, 8)

    kern = functools.partial(
        _fused_forward_kernel, fws=fws, t_seq=t_seq, p0=p0,
        bchunk=bchunk, c_pad=c_pad, n_pad=n_pad)

    in_specs = [pl.BlockSpec((None, bchunk * p0, k0_pad), lambda s: (s, 0, 0))]
    # Weights/affines: full-array blocks with constant index maps (stay resident, no
    # per-step re-DMA).
    in_specs += [pl.BlockSpec(a.shape, lambda s: (0, 0)) for a in arrays]

    out = pl.pallas_call(
        kern,
        grid=(nsteps,),
        out_shape=jax.ShapeDtypeStruct((nsteps, bchunk, n_pad), jnp.float32),
        in_specs=in_specs,
        out_specs=pl.BlockSpec((None, bchunk, n_pad), lambda s: (s, 0, 0)),
        scratch_shapes=[pltpu.VMEM((h_rows, c_pad), jnp.float32),
                        pltpu.VMEM((slab_rows, slab_cols), jnp.bfloat16)],
        compiler_params=pltpu.CompilerParams(
            dimension_semantics=("parallel",)),
    )(xcol, *arrays)

    out = out.reshape(nsteps * bchunk, n_pad)[:B, :shrink_out]
    return out.reshape(B, n_landmarks, embed_dim)


# ----------------------------------------------------------------------------
# Parameter init (deterministic) and one-time packing (padding + bf16 casts)
# ----------------------------------------------------------------------------
def bn_params(key, c):
    k1, k2, k3, k4 = jax.random.split(key, 4)
    gamma = 1.0 + 0.1 * jax.random.normal(k1, (c,), jnp.float32)
    beta = 0.1 * jax.random.normal(k2, (c,), jnp.float32)
    running_mean = 0.05 * jax.random.normal(k3, (c,), jnp.float32)
    running_var = 1.0 + 0.1 * jax.random.uniform(k4, (c,), jnp.float32)
    return gamma, beta, running_mean, running_var


def bn_affine(bn, eps=1e-5):
    gamma, beta, mean, var = bn
    scale = gamma / jnp.sqrt(var + eps)
    bias = beta - mean * scale
    return scale, bias


def init_params(key, n_landmarks, in_chans, embed_dim, channels, filter_widths):
    cin = n_landmarks * in_chans

    def nxt():
        nonlocal key
        key, sub = jax.random.split(key)
        return sub

    params = {}
    params["expand_conv_w"] = 0.1 * jax.random.normal(
        nxt(), (channels, cin, filter_widths[0]), jnp.float32)
    params["expand_bn"] = bn_params(nxt(), channels)
    layers = []
    for i in range(1, len(filter_widths)):
        w1 = 0.1 * jax.random.normal(nxt(), (channels, channels, filter_widths[i]),
                                     jnp.float32)
        bn1 = bn_params(nxt(), channels)
        w2 = 0.1 * jax.random.normal(nxt(), (channels, channels, 1), jnp.float32)
        bn2 = bn_params(nxt(), channels)
        layers.append((w1, bn1, w2, bn2))
    params["layers"] = layers
    shrink_out = n_landmarks * embed_dim
    params["shrink_w"] = 0.1 * jax.random.normal(nxt(), (shrink_out, channels, 1),
                                                 jnp.float32)
    params["shrink_b"] = 0.1 * jax.random.normal(nxt(), (shrink_out,), jnp.float32)
    return params


def pack_params(params, filter_widths, n_landmarks, in_chans, embed_dim, channels):
    """Pad channel axes to 128 lanes, fold BN to affine, cast weights to bf16."""
    cin = n_landmarks * in_chans
    fw0 = filter_widths[0]
    k0_pad = _round_up(fw0 * cin, LANE)
    c_pad = _round_up(channels, LANE)
    shrink_out = n_landmarks * embed_dim
    n_pad = _round_up(shrink_out, LANE)

    def pack_conv(w_oik, in_pad, out_pad):
        # tap-major: each tap's input channels zero-padded to in_pad lanes
        cout, c_in, k = w_oik.shape
        wm = jnp.zeros((k, in_pad, out_pad), jnp.float32)
        wm = wm.at[:, :c_in, :cout].set(jnp.transpose(w_oik, (2, 1, 0)))
        return wm.reshape(k * in_pad, out_pad).astype(jnp.bfloat16)

    def pack_conv_dense(w_oik, k_pad, out_pad):
        # tap-packed: contraction lanes hold fw*c_in real channels, padded ONCE to k_pad
        cout, c_in, k = w_oik.shape
        wt = jnp.transpose(w_oik, (2, 1, 0)).reshape(k * c_in, cout)
        wm = jnp.zeros((k_pad, out_pad), jnp.float32).at[:k * c_in, :cout].set(wt)
        return wm.astype(jnp.bfloat16)

    def pack_affine(scale, bias, pad):
        c = scale.shape[0]
        s = jnp.zeros((1, pad), jnp.float32).at[0, :c].set(scale)
        b = jnp.zeros((1, pad), jnp.float32).at[0, :c].set(bias)
        return s, b

    arrays = []
    s0, b0 = bn_affine(params["expand_bn"])
    s0p, b0p = pack_affine(s0, b0, c_pad)
    arrays += [pack_conv_dense(params["expand_conv_w"], k0_pad, c_pad), s0p, b0p]
    for (w1, bn1, w2, bn2) in params["layers"]:
        s1, b1 = bn_affine(bn1)
        s1p, b1p = pack_affine(s1, b1, c_pad)
        s2, b2 = bn_affine(bn2)
        s2p, b2p = pack_affine(s2, b2, c_pad)
        arrays += [pack_conv(w1, c_pad, c_pad), s1p, b1p,
                   pack_conv(w2, c_pad, c_pad), s2p, b2p]
    # shrink: 1x1 conv with bias (bias-only epilogue)
    ws = pack_conv(params["shrink_w"], c_pad, n_pad)
    bsp = jnp.zeros((1, n_pad), jnp.float32).at[0, :shrink_out].set(params["shrink_b"])
    arrays += [ws, bsp]
    return arrays


# ----------------------------------------------------------------------------
if __name__ == "__main__":
    B = 16                      # 8 folded per grid step -> grid=(2,): both v7x cores busy
    img_size = (29, 4)          # (n_frames, n_landmarks); 29 keeps all block shapes valid
    in_chans = 2
    embed_dim = 8
    channels = 16
    filter_widths = [3, 3, 3]

    key = jax.random.PRNGKey(0)
    kp, kx = jax.random.split(key)
    params = init_params(kp, img_size[1], in_chans, embed_dim, channels, filter_widths)
    arrays = pack_params(params, filter_widths, img_size[1], in_chans, embed_dim,
                         channels)
    x = jax.random.normal(kx, (B, img_size[0], img_size[1], in_chans), jnp.float32)

    fwd = jax.jit(functools.partial(
        patch_embed_forward, filter_widths=tuple(filter_widths),
        n_landmarks=img_size[1], in_chans=in_chans,
        embed_dim=embed_dim, channels=channels))

    out = jax.block_until_ready(fwd(arrays, x))
    assert out.shape == (B, img_size[1], embed_dim), out.shape
    assert bool(jnp.all(jnp.isfinite(out)))
    print("KERNEL_OK")
</pallas_src>

<mosaic_0001>
module attributes {stable_mosaic.version = 11 : i64} {
  func.func @_fused_forward_kernel(%arg0: i32, %arg1: memref<1x216x128xbf16, #tpu.memory_space<vmem>>, %arg2: memref<128x128xbf16, #tpu.memory_space<vmem>>, %arg3: memref<1x128xf32, #tpu.memory_space<vmem>>, %arg4: memref<1x128xf32, #tpu.memory_space<vmem>>, %arg5: memref<384x128xbf16, #tpu.memory_space<vmem>>, %arg6: memref<1x128xf32, #tpu.memory_space<vmem>>, %arg7: memref<1x128xf32, #tpu.memory_space<vmem>>, %arg8: memref<128x128xbf16, #tpu.memory_space<vmem>>, %arg9: memref<1x128xf32, #tpu.memory_space<vmem>>, %arg10: memref<1x128xf32, #tpu.memory_space<vmem>>, %arg11: memref<384x128xbf16, #tpu.memory_space<vmem>>, %arg12: memref<1x128xf32, #tpu.memory_space<vmem>>, %arg13: memref<1x128xf32, #tpu.memory_space<vmem>>, %arg14: memref<128x128xbf16, #tpu.memory_space<vmem>>, %arg15: memref<1x128xf32, #tpu.memory_space<vmem>>, %arg16: memref<1x128xf32, #tpu.memory_space<vmem>>, %arg17: memref<128x128xbf16, #tpu.memory_space<vmem>>, %arg18: memref<1x128xf32, #tpu.memory_space<vmem>>, %arg19: memref<1x8x128xf32, #tpu.memory_space<vmem>>, %arg20: memref<216x128xf32, #tpu.memory_space<vmem>>, %arg21: memref<72x384xbf16, #tpu.memory_space<vmem>>) attributes {dimension_semantics = [#tpu.dimension_semantics<parallel>], iteration_bounds = array<i64: 2>, scalar_prefetch = 0 : i64, scratch_operands = 2 : i64, tpu.core_type = #tpu.core_type<tc>, window_params = [{transform_indices = @transform_0, window_bounds = array<i64: 1, 216, 128>}, {pipeline_mode = #tpu.pipeline_mode<synchronous>, transform_indices = @transform_1, window_bounds = array<i64: 128, 128>}, {pipeline_mode = #tpu.pipeline_mode<synchronous>, transform_indices = @transform_2, window_bounds = array<i64: 1, 128>}, {pipeline_mode = #tpu.pipeline_mode<synchronous>, transform_indices = @transform_3, window_bounds = array<i64: 1, 128>}, {pipeline_mode = #tpu.pipeline_mode<synchronous>, transform_indices = @transform_4, window_bounds = array<i64: 384, 128>}, {pipeline_mode = #tpu.pipeline_mode<synchronous>, transform_indices = @transform_5, window_bounds = array<i64: 1, 128>}, {pipeline_mode = #tpu.pipeline_mode<synchronous>, transform_indices = @transform_6, window_bounds = array<i64: 1, 128>}, {pipeline_mode = #tpu.pipeline_mode<synchronous>, transform_indices = @transform_7, window_bounds = array<i64: 128, 128>}, {pipeline_mode = #tpu.pipeline_mode<synchronous>, transform_indices = @transform_8, window_bounds = array<i64: 1, 128>}, {pipeline_mode = #tpu.pipeline_mode<synchronous>, transform_indices = @transform_9, window_bounds = array<i64: 1, 128>}, {pipeline_mode = #tpu.pipeline_mode<synchronous>, transform_indices = @transform_10, window_bounds = array<i64: 384, 128>}, {pipeline_mode = #tpu.pipeline_mode<synchronous>, transform_indices = @transform_11, window_bounds = array<i64: 1, 128>}, {pipeline_mode = #tpu.pipeline_mode<synchronous>, transform_indices = @transform_12, window_bounds = array<i64: 1, 128>}, {pipeline_mode = #tpu.pipeline_mode<synchronous>, transform_indices = @transform_13, window_bounds = array<i64: 128, 128>}, {pipeline_mode = #tpu.pipeline_mode<synchronous>, transform_indices = @transform_14, window_bounds = array<i64: 1, 128>}, {pipeline_mode = #tpu.pipeline_mode<synchronous>, transform_indices = @transform_15, window_bounds = array<i64: 1, 128>}, {pipeline_mode = #tpu.pipeline_mode<synchronous>, transform_indices = @transform_16, window_bounds = array<i64: 128, 128>}, {pipeline_mode = #tpu.pipeline_mode<synchronous>, transform_indices = @transform_17, window_bounds = array<i64: 1, 128>}, {transform_indices = @transform_18, window_bounds = array<i64: 1, 8, 128>}]} {
    %c0 = arith.constant 0 : index
    %c0_0 = arith.constant 0 : index
    %c0_1 = arith.constant 0 : index
    %0 = vector.load %arg1[%c0, %c0_0, %c0_1] : memref<1x216x128xbf16, #tpu.memory_space<vmem>>, vector<1x216x128xbf16>
    %1 = vector.shape_cast %0 : vector<1x216x128xbf16> to vector<216x128xbf16>
    %c0_2 = arith.constant 0 : index
    %c0_3 = arith.constant 0 : index
    %2 = vector.load %arg2[%c0_2, %c0_3] : memref<128x128xbf16, #tpu.memory_space<vmem>>, vector<128x128xbf16>
    %cst = arith.constant dense<0.000000e+00> : vector<216x128xf32>
    %3 = tpu.matmul %1, %2, %cst {dimension_numbers = #tpu.dot_dimension_numbers<[1], [0], [0], [1], [0, 0, 1, 1], [], []>} : vector<216x128xbf16>, vector<128x128xbf16>, vector<216x128xf32> -> vector<216x128xf32>
    %c0_4 = arith.constant 0 : index
    %c0_5 = arith.constant 0 : index
    %4 = vector.load %arg3[%c0_4, %c0_5] : memref<1x128xf32, #tpu.memory_space<vmem>>, vector<1x128xf32>
    %5 = vector.broadcast %4 : vector<1x128xf32> to vector<216x128xf32>
    %6 = arith.mulf %3, %5 : vector<216x128xf32>
    %c0_6 = arith.constant 0 : index
    %c0_7 = arith.constant 0 : index
    %7 = vector.load %arg4[%c0_6, %c0_7] : memref<1x128xf32, #tpu.memory_space<vmem>>, vector<1x128xf32>
    %8 = vector.broadcast %7 : vector<1x128xf32> to vector<216x128xf32>
    %9 = arith.addf %6, %8 : vector<216x128xf32>
    %cst_8 = arith.constant 0.000000e+00 : f32
    %10 = vector.broadcast %cst_8 : f32 to vector<216x128xf32>
    %11 = arith.maximumf %9, %10 : vector<216x128xf32>
    %c0_9 = arith.constant 0 : index
    %c0_10 = arith.constant 0 : index
    %12 = vector.load %arg20[%c0_9, %c0_10] : memref<216x128xf32, #tpu.memory_space<vmem>>, vector<216x128xf32>
    tpu.vector_store %arg20[%c0_9, %c0_10], %11 {strides = array<i32>} : memref<216x128xf32, #tpu.memory_space<vmem>>, vector<216x128xf32>,
    %c0_11 = arith.constant 0 : index
    %c0_12 = arith.constant 0 : index
    %13 = tpu.strided_load %arg20[%c0_11, %c0_12] {strides = array<i32: 3, 1>} : memref<216x128xf32, #tpu.memory_space<vmem>>, vector<72x128xf32>
    %14 = arith.truncf %13 : vector<72x128xf32> to vector<72x128xbf16>
    %c0_13 = arith.constant 0 : index
    %c0_14 = arith.constant 0 : index
    %15 = vector.load %arg21[%c0_13, %c0_14] : memref<72x384xbf16, #tpu.memory_space<vmem>>, vector<72x128xbf16>
    tpu.vector_store %arg21[%c0_13, %c0_14], %14 {strides = array<i32>} : memref<72x384xbf16, #tpu.memory_space<vmem>>, vector<72x128xbf16>,
    %c1 = arith.constant 1 : index
    %c0_15 = arith.constant 0 : index
    %16 = tpu.strided_load %arg20[%c1, %c0_15] {strides = array<i32: 3, 1>} : memref<216x128xf32, #tpu.memory_space<vmem>>, vector<72x128xf32>
    %17 = arith.truncf %16 : vector<72x128xf32> to vector<72x128xbf16>
    %c0_16 = arith.constant 0 : index
    %c128 = arith.constant 128 : index
    %18 = vector.load %arg21[%c0_16, %c128] : memref<72x384xbf16, #tpu.memory_space<vmem>>, vector<72x128xbf16>
    tpu.vector_store %arg21[%c0_16, %c128], %17 {strides = array<i32>} : memref<72x384xbf16, #tpu.memory_space<vmem>>, vector<72x128xbf16>,
    %c2 = arith.constant 2 : index
    %c0_17 = arith.constant 0 : index
    %19 = tpu.strided_load %arg20[%c2, %c0_17] {strides = array<i32: 3, 1>} : memref<216x128xf32, #tpu.memory_space<vmem>>, vector<72x128xf32>
    %20 = arith.truncf %19 : vector<72x128xf32> to vector<72x128xbf16>
    %c0_18 = arith.constant 0 : index
    %c256 = arith.constant 256 : index
    %21 = vector.load %arg21[%c0_18, %c256] : memref<72x384xbf16, #tpu.memory_space<vmem>>, vector<72x128xbf16>
    tpu.vector_store %arg21[%c0_18, %c256], %20 {strides = array<i32>} : memref<72x384xbf16, #tpu.memory_space<vmem>>, vector<72x128xbf16>,
    %c0_19 = arith.constant 0 : index
    %c0_20 = arith.constant 0 : index
    %22 = vector.load %arg21[%c0_19, %c0_20] : memref<72x384xbf16, #tpu.memory_space<vmem>>, vector<72x384xbf16>
    %c0_21 = arith.constant 0 : index
    %c0_22 = arith.constant 0 : index
    %23 = vector.load %arg5[%c0_21, %c0_22] : memref<384x128xbf16, #tpu.memory_space<vmem>>, vector<384x128xbf16>
    %cst_23 = arith.constant dense<0.000000e+00> : vector<72x128xf32>
    %24 = tpu.matmul %22, %23, %cst_23 {dimension_numbers = #tpu.dot_dimension_numbers<[1], [0], [0], [1], [0, 0, 1, 1], [], []>} : vector<72x384xbf16>, vector<384x128xbf16>, vector<72x128xf32> -> vector<72x128xf32>
    %c0_24 = arith.constant 0 : index
    %c0_25 = arith.constant 0 : index
    %25 = vector.load %arg6[%c0_24, %c0_25] : memref<1x128xf32, #tpu.memory_space<vmem>>, vector<1x128xf32>
    %26 = vector.broadcast %25 : vector<1x128xf32> to vector<72x128xf32>
    %27 = arith.mulf %24, %26 : vector<72x128xf32>
    %c0_26 = arith.constant 0 : index
    %c0_27 = arith.constant 0 : index
    %28 = vector.load %arg7[%c0_26, %c0_27] : memref<1x128xf32, #tpu.memory_space<vmem>>, vector<1x128xf32>
    %29 = vector.broadcast %28 : vector<1x128xf32> to vector<72x128xf32>
    %30 = arith.addf %27, %29 : vector<72x128xf32>
    %cst_28 = arith.constant 0.000000e+00 : f32
    %31 = vector.broadcast %cst_28 : f32 to vector<72x128xf32>
    %32 = arith.maximumf %30, %31 : vector<72x128xf32>
    %33 = arith.truncf %32 : vector<72x128xf32> to vector<72x128xbf16>
    %c0_29 = arith.constant 0 : index
    %c0_30 = arith.constant 0 : index
    %34 = vector.load %arg8[%c0_29, %c0_30] : memref<128x128xbf16, #tpu.memory_space<vmem>>, vector<128x128xbf16>
    %cst_31 = arith.constant dense<0.000000e+00> : vector<72x128xf32>
    %35 = tpu.matmul %33, %34, %cst_31 {dimension_numbers = #tpu.dot_dimension_numbers<[1], [0], [0], [1], [0, 0, 1, 1], [], []>} : vector<72x128xbf16>, vector<128x128xbf16>, vector<72x128xf32> -> vector<72x128xf32>
    %c0_32 = arith.constant 0 : index
    %c0_33 = arith.constant 0 : index
    %36 = vector.load %arg9[%c0_32, %c0_33] : memref<1x128xf32, #tpu.memory_space<vmem>>, vector<1x128xf32>
    %37 = vector.broadcast %36 : vector<1x128xf32> to vector<72x128xf32>
    %38 = arith.mulf %35, %37 : vector<72x128xf32>
    %c0_34 = arith.constant 0 : index
    %c0_35 = arith.constant 0 : index
    %39 = vector.load %arg10[%c0_34, %c0_35] : memref<1x128xf32, #tpu.memory_space<vmem>>, vector<1x128xf32>
    %40 = vector.broadcast %39 : vector<1x128xf32> to vector<72x128xf32>
    %41 = arith.addf %38, %40 : vector<72x128xf32>
    %cst_36 = arith.constant 0.000000e+00 : f32
    %42 = vector.broadcast %cst_36 : f32 to vector<72x128xf32>
    %43 = arith.maximumf %41, %42 : vector<72x128xf32>
    %44 = arith.addf %16, %43 : vector<72x128xf32>
    %c0_37 = arith.constant 0 : index
    %c0_38 = arith.constant 0 : index
    %45 = vector.load %arg20[%c0_37, %c0_38] : memref<216x128xf32, #tpu.memory_space<vmem>>, vector<72x128xf32>
    tpu.vector_store %arg20[%c0_37, %c0_38], %44 {strides = array<i32>} : memref<216x128xf32, #tpu.memory_space<vmem>>, vector<72x128xf32>,
    %c0_39 = arith.constant 0 : index
    %c0_40 = arith.constant 0 : index
    %46 = tpu.strided_load %arg20[%c0_39, %c0_40] {strides = array<i32: 3, 1>} : memref<216x128xf32, #tpu.memory_space<vmem>>, vector<24x128xf32>
    %47 = arith.truncf %46 : vector<24x128xf32> to vector<24x128xbf16>
    %c0_41 = arith.constant 0 : index
    %c0_42 = arith.constant 0 : index
    %48 = vector.load %arg21[%c0_41, %c0_42] : memref<72x384xbf16, #tpu.memory_space<vmem>>, vector<24x128xbf16>
    tpu.vector_store %arg21[%c0_41, %c0_42], %47 {strides = array<i32>} : memref<72x384xbf16, #tpu.memory_space<vmem>>, vector<24x128xbf16>,
    %c1_43 = arith.constant 1 : index
    %c0_44 = arith.constant 0 : index
    %49 = tpu.strided_load %arg20[%c1_43, %c0_44] {strides = array<i32: 3, 1>} : memref<216x128xf32, #tpu.memory_space<vmem>>, vector<24x128xf32>
    %50 = arith.truncf %49 : vector<24x128xf32> to vector<24x128xbf16>
    %c0_45 = arith.constant 0 : index
    %c128_46 = arith.constant 128 : index
    %51 = vector.load %arg21[%c0_45, %c128_46] : memref<72x384xbf16, #tpu.memory_space<vmem>>, vector<24x128xbf16>
    tpu.vector_store %arg21[%c0_45, %c128_46], %50 {strides = array<i32>} : memref<72x384xbf16, #tpu.memory_space<vmem>>, vector<24x128xbf16>,
    %c2_47 = arith.constant 2 : index
    %c0_48 = arith.constant 0 : index
    %52 = tpu.strided_load %arg20[%c2_47, %c0_48] {strides = array<i32: 3, 1>} : memref<216x128xf32, #tpu.memory_space<vmem>>, vector<24x128xf32>
    %53 = arith.truncf %52 : vector<24x128xf32> to vector<24x128xbf16>
    %c0_49 = arith.constant 0 : index
    %c256_50 = arith.constant 256 : index
    %54 = vector.load %arg21[%c0_49, %c256_50] : memref<72x384xbf16, #tpu.memory_space<vmem>>, vector<24x128xbf16>
    tpu.vector_store %arg21[%c0_49, %c256_50], %53 {strides = array<i32>} : memref<72x384xbf16, #tpu.memory_space<vmem>>, vector<24x128xbf16>,
    %c0_51 = arith.constant 0 : index
    %c0_52 = arith.constant 0 : index
    %55 = vector.load %arg21[%c0_51, %c0_52] : memref<72x384xbf16, #tpu.memory_space<vmem>>, vector<24x384xbf16>
    %c0_53 = arith.constant 0 : index
    %c0_54 = arith.constant 0 : index
    %56 = vector.load %arg11[%c0_53, %c0_54] : memref<384x128xbf16, #tpu.memory_space<vmem>>, vector<384x128xbf16>
    %cst_55 = arith.constant dense<0.000000e+00> : vector<24x128xf32>
    %57 = tpu.matmul %55, %56, %cst_55 {dimension_numbers = #tpu.dot_dimension_numbers<[1], [0], [0], [1], [0, 0, 1, 1], [], []>} : vector<24x384xbf16>, vector<384x128xbf16>, vector<24x128xf32> -> vector<24x128xf32>
    %c0_56 = arith.constant 0 : index
    %c0_57 = arith.constant 0 : index
    %58 = vector.load %arg12[%c0_56, %c0_57] : memref<1x128xf32, #tpu.memory_space<vmem>>, vector<1x128xf32>
    %59 = vector.broadcast %58 : vector<1x128xf32> to vector<24x128xf32>
    %60 = arith.mulf %57, %59 : vector<24x128xf32>
    %c0_58 = arith.constant 0 : index
    %c0_59 = arith.constant 0 : index
    %61 = vector.load %arg13[%c0_58, %c0_59] : memref<1x128xf32, #tpu.memory_space<vmem>>, vector<1x128xf32>
    %62 = vector.broadcast %61 : vector<1x128xf32> to vector<24x128xf32>
    %63 = arith.addf %60, %62 : vector<24x128xf32>
    %cst_60 = arith.constant 0.000000e+00 : f32
    %64 = vector.broadcast %cst_60 : f32 to vector<24x128xf32>
    %65 = arith.maximumf %63, %64 : vector<24x128xf32>
    %66 = arith.truncf %65 : vector<24x128xf32> to vector<24x128xbf16>
    %c0_61 = arith.constant 0 : index
    %c0_62 = arith.constant 0 : index
    %67 = vector.load %arg14[%c0_61, %c0_62] : memref<128x128xbf16, #tpu.memory_space<vmem>>, vector<128x128xbf16>
    %cst_63 = arith.constant dense<0.000000e+00> : vector<24x128xf32>
    %68 = tpu.matmul %66, %67, %cst_63 {dimension_numbers = #tpu.dot_dimension_numbers<[1], [0], [0], [1], [0, 0, 1, 1], [], []>} : vector<24x128xbf16>, vector<128x128xbf16>, vector<24x128xf32> -> vector<24x128xf32>
    %c0_64 = arith.constant 0 : index
    %c0_65 = arith.constant 0 : index
    %69 = vector.load %arg15[%c0_64, %c0_65] : memref<1x128xf32, #tpu.memory_space<vmem>>, vector<1x128xf32>
    %70 = vector.broadcast %69 : vector<1x128xf32> to vector<24x128xf32>
    %71 = arith.mulf %68, %70 : vector<24x128xf32>
    %c0_66 = arith.constant 0 : index
    %c0_67 = arith.constant 0 : index
    %72 = vector.load %arg16[%c0_66, %c0_67] : memref<1x128xf32, #tpu.memory_space<vmem>>, vector<1x128xf32>
    %73 = vector.broadcast %72 : vector<1x128xf32> to vector<24x128xf32>
    %74 = arith.addf %71, %73 : vector<24x128xf32>
    %cst_68 = arith.constant 0.000000e+00 : f32
    %75 = vector.broadcast %cst_68 : f32 to vector<24x128xf32>
    %76 = arith.maximumf %74, %75 : vector<24x128xf32>
    %77 = arith.addf %49, %76 : vector<24x128xf32>
    %78 = tpu.iota {dimensions = array<i32: 1>} : vector<8x24xi32>
    %79 = tpu.iota {dimensions = array<i32: 0>} : vector<8x24xi32>
    %c3_i32 = arith.constant 3 : i32
    %80 = vector.broadcast %c3_i32 : i32 to vector<8x24xi32>
    %81 = arith.muli %79, %80 : vector<8x24xi32>
    %82 = arith.cmpi sge, %78, %81 : vector<8x24xi32>
    %c3_i32_69 = arith.constant 3 : i32
    %83 = vector.broadcast %c3_i32_69 : i32 to vector<8x24xi32>
    %84 = arith.addi %81, %83 : vector<8x24xi32>
    %85 = arith.cmpi slt, %78, %84 : vector<8x24xi32>
    %86 = arith.andi %82, %85 : vector<8x24xi1>
    %cst_70 = arith.constant 0.333333343 : f32
    %cst_71 = arith.constant 0.000000e+00 : f32
    %87 = vector.broadcast %cst_70 : f32 to vector<8x24xf32>
    %88 = vector.broadcast %cst_71 : f32 to vector<8x24xf32>
    %89 = arith.select %86, %87, %88 : vector<8x24xi1>, vector<8x24xf32>
    %cst_72 = arith.constant dense<0.000000e+00> : vector<8x128xf32>
    %90 = tpu.matmul %89, %77, %cst_72 {dimension_numbers = #tpu.dot_dimension_numbers<[1], [0], [0], [1], [0, 0, 1, 1], [], []>} : vector<8x24xf32>, vector<24x128xf32>, vector<8x128xf32> -> vector<8x128xf32>
    %91 = arith.truncf %90 : vector<8x128xf32> to vector<8x128xbf16>
    %c0_73 = arith.constant 0 : index
    %c0_74 = arith.constant 0 : index
    %92 = vector.load %arg17[%c0_73, %c0_74] : memref<128x128xbf16, #tpu.memory_space<vmem>>, vector<128x128xbf16>
    %cst_75 = arith.constant dense<0.000000e+00> : vector<8x128xf32>
    %93 = tpu.matmul %91, %92, %cst_75 {dimension_numbers = #tpu.dot_dimension_numbers<[1], [0], [0], [1], [0, 0, 1, 1], [], []>} : vector<8x128xbf16>, vector<128x128xbf16>, vector<8x128xf32> -> vector<8x128xf32>
    %c0_76 = arith.constant 0 : index
    %c0_77 = arith.constant 0 : index
    %94 = vector.load %arg18[%c0_76, %c0_77] : memref<1x128xf32, #tpu.memory_space<vmem>>, vector<1x128xf32>
    %95 = vector.broadcast %94 : vector<1x128xf32> to vector<8x128xf32>
    %96 = arith.addf %93, %95 : vector<8x128xf32>
    %c0_78 = arith.constant 0 : index
    %c0_79 = arith.constant 0 : index
    %c0_80 = arith.constant 0 : index
    %97 = vector.load %arg19[%c0_78, %c0_79, %c0_80] : memref<1x8x128xf32, #tpu.memory_space<vmem>>, vector<1x8x128xf32>
    %98 = vector.shape_cast %97 : vector<1x8x128xf32> to vector<8x128xf32>
    %99 = vector.shape_cast %96 : vector<8x128xf32> to vector<1x8x128xf32>
    tpu.vector_store %arg19[%c0_78, %c0_79, %c0_80], %99 {strides = array<i32>} : memref<1x8x128xf32, #tpu.memory_space<vmem>>, vector<1x8x128xf32>,
    return
  }
  func.func @transform_0(%arg0: i32) -> (i32, i32, i32) {
    %c0_i32 = arith.constant 0 : i32
    %c0_i32_0 = arith.constant 0 : i32
    %c0_i32_1 = arith.constant 0 : i32
    return %arg0, %c0_i32, %c0_i32_0 : i32, i32, i32
  }
  func.func @transform_1(%arg0: i32) -> (i32, i32) {
    %c0_i32 = arith.constant 0 : i32
    %c0_i32_0 = arith.constant 0 : i32
    %c0_i32_1 = arith.constant 0 : i32
    return %c0_i32, %c0_i32_0 : i32, i32
  }
  func.func @transform_2(%arg0: i32) -> (i32, i32) {
    %c0_i32 = arith.constant 0 : i32
    %c0_i32_0 = arith.constant 0 : i32
    %c0_i32_1 = arith.constant 0 : i32
    return %c0_i32, %c0_i32_0 : i32, i32
  }
  func.func @transform_3(%arg0: i32) -> (i32, i32) {
    %c0_i32 = arith.constant 0 : i32
    %c0_i32_0 = arith.constant 0 : i32
    %c0_i32_1 = arith.constant 0 : i32
    return %c0_i32, %c0_i32_0 : i32, i32
  }
  func.func @transform_4(%arg0: i32) -> (i32, i32) {
    %c0_i32 = arith.constant 0 : i32
    %c0_i32_0 = arith.constant 0 : i32
    %c0_i32_1 = arith.constant 0 : i32
    return %c0_i32, %c0_i32_0 : i32, i32
  }
  func.func @transform_5(%arg0: i32) -> (i32, i32) {
    %c0_i32 = arith.constant 0 : i32
    %c0_i32_0 = arith.constant 0 : i32
    %c0_i32_1 = arith.constant 0 : i32
    return %c0_i32, %c0_i32_0 : i32, i32
  }
  func.func @transform_6(%arg0: i32) -> (i32, i32) {
    %c0_i32 = arith.constant 0 : i32
    %c0_i32_0 = arith.constant 0 : i32
    %c0_i32_1 = arith.constant 0 : i32
    return %c0_i32, %c0_i32_0 : i32, i32
  }
  func.func @transform_7(%arg0: i32) -> (i32, i32) {
    %c0_i32 = arith.constant 0 : i32
    %c0_i32_0 = arith.constant 0 : i32
    %c0_i32_1 = arith.constant 0 : i32
    return %c0_i32, %c0_i32_0 : i32, i32
  }
  func.func @transform_8(%arg0: i32) -> (i32, i32) {
    %c0_i32 = arith.constant 0 : i32
    %c0_i32_0 = arith.constant 0 : i32
    %c0_i32_1 = arith.constant 0 : i32
    return %c0_i32, %c0_i32_0 : i32, i32
  }
  func.func @transform_9(%arg0: i32) -> (i32, i32) {
    %c0_i32 = arith.constant 0 : i32
    %c0_i32_0 = arith.constant 0 : i32
    %c0_i32_1 = arith.constant 0 : i32
    return %c0_i32, %c0_i32_0 : i32, i32
  }
  func.func @transform_10(%arg0: i32) -> (i32, i32) {
    %c0_i32 = arith.constant 0 : i32
    %c0_i32_0 = arith.constant 0 : i32
    %c0_i32_1 = arith.constant 0 : i32
    return %c0_i32, %c0_i32_0 : i32, i32
  }
  func.func @transform_11(%arg0: i32) -> (i32, i32) {
    %c0_i32 = arith.constant 0 : i32
    %c0_i32_0 = arith.constant 0 : i32
    %c0_i32_1 = arith.constant 0 : i32
    return %c0_i32, %c0_i32_0 : i32, i32
  }
  func.func @transform_12(%arg0: i32) -> (i32, i32) {
    %c0_i32 = arith.constant 0 : i32
    %c0_i32_0 = arith.constant 0 : i32
    %c0_i32_1 = arith.constant 0 : i32
    return %c0_i32, %c0_i32_0 : i32, i32
  }
  func.func @transform_13(%arg0: i32) -> (i32, i32) {
    %c0_i32 = arith.constant 0 : i32
    %c0_i32_0 = arith.constant 0 : i32
    %c0_i32_1 = arith.constant 0 : i32
    return %c0_i32, %c0_i32_0 : i32, i32
  }
  func.func @transform_14(%arg0: i32) -> (i32, i32) {
    %c0_i32 = arith.constant 0 : i32
    %c0_i32_0 = arith.constant 0 : i32
    %c0_i32_1 = arith.constant 0 : i32
    return %c0_i32, %c0_i32_0 : i32, i32
  }
  func.func @transform_15(%arg0: i32) -> (i32, i32) {
    %c0_i32 = arith.constant 0 : i32
    %c0_i32_0 = arith.constant 0 : i32
    %c0_i32_1 = arith.constant 0 : i32
    return %c0_i32, %c0_i32_0 : i32, i32
  }
  func.func @transform_16(%arg0: i32) -> (i32, i32) {
    %c0_i32 = arith.constant 0 : i32
    %c0_i32_0 = arith.constant 0 : i32
    %c0_i32_1 = arith.constant 0 : i32
    return %c0_i32, %c0_i32_0 : i32, i32
  }
  func.func @transform_17(%arg0: i32) -> (i32, i32) {
    %c0_i32 = arith.constant 0 : i32
    %c0_i32_0 = arith.constant 0 : i32
    %c0_i32_1 = arith.constant 0 : i32
    return %c0_i32, %c0_i32_0 : i32, i32
  }
  func.func @transform_18(%arg0: i32) -> (i32, i32, i32) {
    %c0_i32 = arith.constant 0 : i32
    %c0_i32_0 = arith.constant 0 : i32
    %c0_i32_1 = arith.constant 0 : i32
    return %arg0, %c0_i32, %c0_i32_0 : i32, i32, i32
  }
}

</mosaic_0001>

<bundles_post_ra>
// kernel: patch_embed_forward.1
= control target key start
LH: loop header
LB: loop body
LE: loop exit
PB: predicated region body
PF: predicated region fallthrough
CT: control target
= control target key end

     0   :  { %s2912_s27 = smov 0   ;;  %s3384_s0 = inlined_call_operand.vmem [shape: bf16[2,216,128], index: 0, kind: input, shape index: {}]   ;;  %s3385_s1 = inlined_call_operand.vmem [shape: bf16[128,128], index: 1, kind: input, shape index: {}]   ;;  %s3386_s2 = inlined_call_operand.vmem [shape: f32[1,128], index: 2, kind: input, shape index: {}]   ;;  %s3387_s3 = inlined_call_operand.vmem [shape: f32[1,128], index: 3, kind: input, shape index: {}]   ;;  %s3388_s4 = inlined_call_operand.vmem [shape: bf16[384,128], index: 4, kind: input, shape index: {}]   ;;  %s3389_s5 = inlined_call_operand.vmem [shape: f32[1,128], index: 5, kind: input, shape index: {}]   ;;  %s3390_s6 = inlined_call_operand.vmem [shape: f32[1,128], index: 6, kind: input, shape index: {}]   ;;  %s3391_s7 = inlined_call_operand.vmem [shape: bf16[128,128], index: 7, kind: input, shape index: {}]   ;;  %s3392_s8 = inlined_call_operand.vmem [shape: f32[1,128], index: 8, kind: input, shape index: {}]   ;;  %s3393_s9 = inlined_call_operand.vmem [shape: f32[1,128], index: 9, kind: input, shape index: {}]   ;;  %s3394_s10 = inlined_call_operand.vmem [shape: bf16[384,128], index: 10, kind: input, shape index: {}]   ;;  %s3395_s11 = inlined_call_operand.vmem [shape: f32[1,128], index: 11, kind: input, shape index: {}]   ;;  %s3396_s12 = inlined_call_operand.vmem [shape: f32[1,128], index: 12, kind: input, shape index: {}]   ;;  %s3397_s13 = inlined_call_operand.vmem [shape: bf16[128,128], index: 13, kind: input, shape index: {}]   ;;  %s3398_s14 = inlined_call_operand.vmem [shape: f32[1,128], index: 14, kind: input, shape index: {}]   ;;  %s3399_s15 = inlined_call_operand.vmem [shape: f32[1,128], index: 15, kind: input, shape index: {}]   ;;  %s3400_s16 = inlined_call_operand.vmem [shape: bf16[128,128], index: 16, kind: input, shape index: {}]   ;;  %s3401_s17 = inlined_call_operand.vmem [shape: f32[1,128], index: 17, kind: input, shape index: {}]   ;;  %s3402_s18 = inlined_call_operand.vmem [shape: f32[2,8,128], index: 18, kind: output, shape index: {}]  }
   0x1   :  { %3404 = sst [smem:[#allocation4_spill]] %s3384_s0 }
   0x2   :  { %3405 = sst [smem:[#allocation5_spill]] %s3385_s1 }
   0x3   :  { %3406 = sst [smem:[#allocation6_spill]] %s3386_s2 }
   0x4 LB: > { %s2221_s28 = sadd.s32 4294967295, %s2814_s27   ;;  %p2225_p0 = scmp.ge.s32.totalorder %s2814_s27, 1  ;;  %s2814_s27 = sphi %s2912_s27, %s28_s27  }
   0x5   : > { %p512_p1 = scmp.lt.s32.totalorder %s2814_s27, 3 }
   0x7   : > { %p513_p2 = pnand %p2225_p0, %p512_p1 }
   0x8   : > { %s3407_s0 = sld [smem:[#allocation5_spill]] (!%p513_p2)  ;;  %p565_p3 = scmp.lt.s32.totalorder (!%p513_p2), %s2221_s28, 1 }
   0x9   : > { %516 = sbr.rel (%p513_p2) target bundleno = 1269 (0x4f5), region = 92  ;;  %s3408_s2 = sld [smem:[#allocation4_spill]] (!%p513_p2) }
   0xa   : > { %s3409_s26 = sld [smem:[#allocation6_spill]] (!%p513_p2) }
   0xe   : > { %v2683_v0 = vld [vmem:[%s3407_s0 + $0x38] sm:$0xff]  ;;  %v2682_v1 = vld [vmem:[%s3407_s0 + $0x30] sm:$0xff]  ;;  %v2681_v2 = vld [vmem:[%s3407_s0 + $0x28] sm:$0xff]  ;;  %s3411_s28 = smov (!%p565_p3, %s2221_s28), 1  ;;  %vm2061_vm3 = vcmask 195584  }
   0xf   : > { %747 = vmatpush.bf16.msra.mxu0 %v2683_v0  ;;  %2771 = vmatpush.bf16.msra.mxu2 %v2683_v0  ;;  %v2680_v3 = vld [vmem:[%s3407_s0 + $0x20] sm:$0xff]  ;;  %v2679_v4 = vld [vmem:[%s3407_s0 + $0x18] sm:$0xff]  ;;  %v2678_v5 = vld [vmem:[%s3407_s0 + $0x10] sm:$0xff]  ;;  %s2787_s19 = smul.u32 108, %s3411_s28  ;;  %s2227_s25 = sshll.u32 %s3411_s28, 3 }
  0x10   : > { %v2677_v6 = vld [vmem:[%s3407_s0 + $0x8] sm:$0xff]  ;;  %v2676_v7 = vld [vmem:[%s3407_s0] sm:$0xff]  ;;  %v2703_v23 = vld [vmem:[%s3388_s4 + $0x38] sm:$0xff]  ;;  %s573_s1 = scalar_lea.vmem %s3402_s18, %s2227_s25 }
  0x11   : > { %s2950_s23 = scalar_lea.vmem %s3408_s2, %s2787_s19  ;;  %v2965_v18 = vld [vmem:[%s3409_s26] ss:$0 sm:$0xff]  ;;  %v2711_v24 = vld [vmem:[%s3388_s4 + $0x78] sm:$0xff]  ;;  %1333 = vmatpush.bf16.msra.mxu1 %v2703_v23  ;;  %v2702_v28 = vld [vmem:[%s3388_s4 + $0x30] sm:$0xff] }
  0x12   : > { %v2663_v8 = vld [vmem:[%s2950_s23] sm:$0xff]  ;;  %v2664_v9 = vld [vmem:[%s2950_s23 + $0x8] sm:$0xff]  ;;  %v2665_v10 = vld [vmem:[%s2950_s23 + $0x10] sm:$0xff] }
  0x13   : > { %748 = vmatpush.bf16.msra.mxu0 %v2682_v1  ;;  %2772 = vmatpush.bf16.msra.mxu2 %v2682_v1  ;;  %v2666_v11 = vld [vmem:[%s2950_s23 + $0x18] sm:$0xff]  ;;  %v2667_v12 = vld [vmem:[%s2950_s23 + $0x20] sm:$0xff]  ;;  %v2668_v13 = vld [vmem:[%s2950_s23 + $0x28] sm:$0xff] }
  0x14   : > { %v2669_v14 = vld [vmem:[%s2950_s23 + $0x30] sm:$0xff]  ;;  %v2674_v15 = vld [vmem:[%s2950_s23 + $0x58] sm:$0xff]  ;;  %v2675_v17 = vld [vmem:[%s2950_s23 + $0x60] sm:$0xff] }
  0x15   : > { %v2670_v16 = vld [vmem:[%s2950_s23 + $0x38] sm:$0xff]  ;;  %v2970_v19 = vld [vmem:[%s3387_s3] ss:$0 sm:$0xff]  ;;  %v2710_v29 = vld [vmem:[%s3388_s4 + $0x70] sm:$0xff]  ;;  %1334 = vmatpush.bf16.msra.mxu1 %v2702_v28 }
  0x16   : > { %v2671_v20 = vld [vmem:[%s2950_s23 + $0x40] sm:$0xff]  ;;  %v2719_v25 = vld [vmem:[%s3388_s4 + $0xb8] sm:$0xff]  ;;  %v2718_v30 = vld [vmem:[%s3388_s4 + $0xb0] sm:$0xff] }
  0x17   : > { %749 = vmatpush.bf16.msra.mxu0 %v2681_v2  ;;  %2773 = vmatpush.bf16.msra.mxu2 %v2681_v2  ;;  %v600_v31 = vld [vmem:[%s2950_s23 + $0x68] sm:$0xf]  ;;  %v2700_v41 = vld [vmem:[%s3388_s4 + $0x20] sm:$0xff]  ;;  %v2699_v47 = vld [vmem:[%s3388_s4 + $0x18] sm:$0xff] }
  0x18   : > { %1399 = vmatpush.bf16.msra.mxu3 %v2719_v25  ;;  %v670_v33 = vunpack.c.l.b16 %v600_v31  ;;  %v2701_v36 = vld [vmem:[%s3388_s4 + $0x28] sm:$0xff]  ;;  %v2708_v42 = vld [vmem:[%s3388_s4 + $0x60] sm:$0xff]  ;;  %v2707_v48 = vld [vmem:[%s3388_s4 + $0x58] sm:$0xff] }
  0x19   : > { %v2709_v37 = vld [vmem:[%s3388_s4 + $0x68] sm:$0xff]  ;;  %1335 = vmatpush.bf16.msra.mxu1 %v2701_v36  ;;  %v2716_v43 = vld [vmem:[%s3388_s4 + $0xa0] sm:$0xff]  ;;  %v2715_v49 = vld [vmem:[%s3388_s4 + $0x98] sm:$0xff] }
  0x1a   : > { %v684_v35 = vpack.c.b16 %v670_v33, %v670_v33  ;;  %v2717_v38 = vld [vmem:[%s3388_s4 + $0xa8] sm:$0xff]  ;;  %v2698_v52 = vld [vmem:[%s3388_s4 + $0x10] sm:$0xff]  ;;  %v2696_v2 = vld [vmem:[%s3388_s4] sm:$0xff] }
  0x1b   : > { %750 = vmatpush.bf16.msra.mxu0 %v2680_v3  ;;  %2774 = vmatpush.bf16.msra.mxu2 %v2680_v3  ;;  %v2672_v44 = vld [vmem:[%s2950_s23 + $0x48] sm:$0xff]  ;;  %v2706_v53 = vld [vmem:[%s3388_s4 + $0x50] sm:$0xff]  ;;  %v2704_v3 = vld [vmem:[%s3388_s4 + $0x40] sm:$0xff] }
  0x1c   : > { %1400 = vmatpush.bf16.msra.mxu3 %v2718_v30  ;;  %v2714_v54 = vld [vmem:[%s3388_s4 + $0x90] sm:$0xff]  ;;  %v2697_v57 = vld [vmem:[%s3388_s4 + $0x8] sm:$0xff] }
  0x1d   : > { %1336 = vmatpush.bf16.msra.mxu1 %v2700_v41  ;;  %v2705_v58 = vld [vmem:[%s3388_s4 + $0x48] sm:$0xff]  ;;  %v2673_v62 = vld [vmem:[%s2950_s23 + $0x50] sm:$0xff] }
  0x1e   : > { %v2713_v59 = vld [vmem:[%s3388_s4 + $0x88] sm:$0xff] }
  0x1f   : > { %751 = vmatpush.bf16.msra.mxu0 %v2679_v4  ;;  %2775 = vmatpush.bf16.msra.mxu2 %v2679_v4  ;;  %v2712_v4 = vld [vmem:[%s3388_s4 + $0x80] sm:$0xff] }
  0x20   : > { %1401 = vmatpush.bf16.msra.mxu3 %v2717_v38 }
  0x21   : > { %1337 = vmatpush.bf16.msra.mxu1 %v2699_v47 }
  0x23   : > { %752 = vmatpush.bf16.msra.mxu0 %v2678_v5  ;;  %2776 = vmatpush.bf16.msra.mxu2 %v2678_v5 }
  0x24   : > { %1402 = vmatpush.bf16.msra.mxu3 %v2716_v43 }
  0x25   : > { %1338 = vmatpush.bf16.msra.mxu1 %v2698_v52 }
  0x27   : > { %753 = vmatpush.bf16.msra.mxu0 %v2677_v6  ;;  %2777 = vmatpush.bf16.msra.mxu2 %v2677_v6 }
  0x28   : > { %1403 = vmatpush.bf16.msra.mxu3 %v2715_v49 }
  0x29   : > { %1339 = vmatpush.bf16.msra.mxu1 %v2697_v57 }
  0x2b   : > { %754 = vmatpush.bf16.msra.mxu0 %v2676_v7  ;;  %2778 = vmatpush.bf16.msra.mxu2 %v2676_v7 }
  0x2c   : > { %1404 = vmatpush.bf16.msra.mxu3 %v2714_v54 }
  0x2d   : > { %1340 = vmatpush.bf16.msra.mxu1 %v2696_v2 }
  0x2e   : > { %755 = vmatmul.bf16.vlgmr.msra.gmra.mxu0 %v2663_v8  ;;  %810 = vmatmul.bf16.vlgmr.msra.gmra.mxu2 %v2674_v15 }
  0x2f   : > { %1366 = vmatpush.bf16.msrb.mxu2 %v2711_v24 }
  0x30   : > { %1405 = vmatpush.bf16.msra.mxu3 %v2713_v59 }
  0x33   : > { %1367 = vmatpush.bf16.msrb.mxu2 %v2710_v29 }
  0x34   : > { %1406 = vmatpush.bf16.msra.mxu3 %v2712_v4 }
  0x37   : > { %1368 = vmatpush.bf16.msrb.mxu2 %v2709_v37 }
  0x3b   : > { %1369 = vmatpush.bf16.msrb.mxu2 %v2708_v42 }
  0x3e   : > { %760 = vmatmul.bf16.gmra.mxu0 %v2664_v9  ;;  %815 = vmatmul.bf16.gmra.mxu2 %v2675_v17 }
  0x3f   : > { %1370 = vmatpush.bf16.msrb.mxu2 %v2707_v48 }
  0x43   : > { %1371 = vmatpush.bf16.msrb.mxu2 %v2706_v53 }
  0x47   : > { %1372 = vmatpush.bf16.msrb.mxu2 %v2705_v58 }
  0x4b   : > { %1373 = vmatpush.bf16.msrb.mxu2 %v2704_v3 }
  0x4e   : > { %765 = vmatmul.bf16.gmra.mxu0 %v2665_v10  ;;  %820 = vmatmul.bf16.gmra.mxu2 %v684_v35 }
  0x5e   : > { %770 = vmatmul.bf16.gmra.mxu0 %v2666_v11 }
  0x6e   : > { %775 = vmatmul.bf16.gmra.mxu0 %v2667_v12 }
  0x7e   : > { %780 = vmatmul.bf16.gmra.mxu0 %v2668_v13 }
  0x8e   : > { %785 = vmatmul.bf16.gmra.mxu0 %v2669_v14 }
  0x9e   : > { %790 = vmatmul.bf16.gmra.mxu0 %v2670_v16 }
  0xab   : > { %v756_v21 = vpop.f32.mrf.mxu0 }
  0xac   : > { %v829_v22 = vmul.f32 %v2965_v18, %v756_v21 }
  0xae   : > { %v860_v26 = vadd.f32 %v2970_v19, %v829_v22  ;;  %795 = vmatmul.bf16.gmra.mxu0 %v2671_v20 }
  0xb0   : > { %v887_v27 = vmax.f32 %v860_v26, 0.0 }
  0xb2   : > { %914 = vst [vmem:[#allocation2] sm:$0xff] %v887_v27 }
  0xb3   : > { %v758_v32 = vpop.f32.mrf.mxu0 }
  0xb4   : > { %v830_v34 = vmul.f32 %v2965_v18, %v758_v32 }
  0xb6   : > { %v861_v39 = vadd.f32 %v2970_v19, %v830_v34 }
  0xb8   : > { %v888_v40 = vmax.f32 %v861_v39, 0.0 }
  0xba   : > { %915 = vst [vmem:[#allocation2 + $0x8] sm:$0xff] %v888_v40 }
  0xbb   : > { %v761_v45 = vpop.f32.mrf.mxu0 }
  0xbc   : > { %v831_v46 = vmul.f32 %v2965_v18, %v761_v45 }
  0xbe   : > { %v862_v50 = vadd.f32 %v2970_v19, %v831_v46  ;;  %800 = vmatmul.bf16.gmra.mxu0 %v2672_v44 }
  0xc0   : > { %v889_v51 = vmax.f32 %v862_v50, 0.0 }
  0xc2   : > { %916 = vst [vmem:[#allocation2 + $0x10] sm:$0xff] %v889_v51 }
  0xc3   : > { %v763_v55 = vpop.f32.mrf.mxu0 }
  0xc4   : > { %v832_v56 = vmul.f32 %v2965_v18, %v763_v55 }
  0xc6   : > { %v863_v60 = vadd.f32 %v2970_v19, %v832_v56 }
  0xc8   : > { %v890_v61 = vmax.f32 %v863_v60, 0.0 }
  0xc9   : > { %v941_v63 = vld [vmem:[#allocation2] ss:$3 sm:$0xff]  ;;  %v3047_v0 = vld [vmem:[#allocation2 + $0x1] ss:$3 sm:$0xff]  ;;  %v1013_v1 = vld [vmem:[#allocation2 + $0x2] ss:$3 sm:$0xff] }
  0xca   : > { %917 = vst [vmem:[#allocation2 + $0x18] sm:$0xff] %v890_v61  ;;  %v958_v5 = vpack.c.bf16 %v941_v63, %v941_v63  ;;  %v994_v6 = vpack.c.bf16 %v3047_v0, %v3047_v0  ;;  %v1030_v7 = vpack.c.bf16 %v1013_v1, %v1013_v1 }
  0xcb   : > { %v766_v8 = vpop.f32.mrf.mxu0 }
  0xcc   : > { %v833_v9 = vmul.f32 %v2965_v18, %v766_v8  ;;  %967 = vst [vmem:[#allocation3] sm:$0xf] %v958_v5 }
  0xcd   : > { %1003 = vst [vmem:[#allocation3 + $0x4] sm:$0xf] %v994_v6 }
  0xce   : > { %v864_v10 = vadd.f32 %v2970_v19, %v833_v9  ;;  %805 = vmatmul.bf16.gmra.mxu0 %v2673_v62  ;;  %1039 = vst [vmem:[#allocation3 + $0x8] sm:$0xf] %v1030_v7 }
  0xd0   : > { %v891_v11 = vmax.f32 %v864_v10, 0.0 }
  0xd2   : > { %918 = vst [vmem:[#allocation2 + $0x20] sm:$0xff] %v891_v11 }
  0xd3   : > { %v768_v12 = vpop.f32.mrf.mxu0  ;;  %v2314_v33 = vld [vmem:[#allocation3] sm:$0xf] }
  0xd4   : > { %v834_v13 = vmul.f32 %v2965_v18, %v768_v12  ;;  %v2684_v37 = vld [vmem:[#allocation3 + $0x4] sm:$0xf] }
  0xd5   : > { %v2322_v40 = vld [vmem:[#allocation3 + $0x8] sm:$0xf] }
  0xd6   : > { %v865_v14 = vadd.f32 %v2970_v19, %v834_v13 }
  0xd8   : > { %v892_v15 = vmax.f32 %v865_v14, 0.0 }
  0xda   : > { %919 = vst [vmem:[#allocation2 + $0x28] sm:$0xff] %v892_v15 }
  0xdb   : > { %v771_v16 = vpop.f32.mrf.mxu0 }
  0xdc   : > { %v835_v17 = vmul.f32 %v2965_v18, %v771_v16 }
  0xde   : > { %v866_v20 = vadd.f32 %v2970_v19, %v835_v17  ;;  %v811_v17 = vpop.f32.mrf.mxu2 }
  0xe0   : > { %v893_v21 = vmax.f32 %v866_v20, 0.0 }
  0xe1   : > { %v943_v22 = vld [vmem:[#allocation2 + $0x18] ss:$3 sm:$0xff]  ;;  %v3066_v23 = vld [vmem:[#allocation2 + $0x19] ss:$3 sm:$0xff]  ;;  %v1015_v24 = vld [vmem:[#allocation2 + $0x1a] ss:$3 sm:$0xff] }
  0xe2   : > { %920 = vst [vmem:[#allocation2 + $0x30] sm:$0xff] %v893_v21  ;;  %v959_v25 = vpack.c.bf16 %v943_v22, %v943_v22  ;;  %v995_v26 = vpack.c.bf16 %v3066_v23, %v3066_v23  ;;  %v1031_v27 = vpack.c.bf16 %v1015_v24, %v1015_v24 }
  0xe3   : > { %v773_v28 = vpop.f32.mrf.mxu0 }
  0xe4   : > { %v836_v29 = vmul.f32 %v2965_v18, %v773_v28  ;;  %968 = vst [vmem:[#allocation3 + $0xc] sm:$0xf] %v959_v25 }
  0xe5   : > { %1004 = vst [vmem:[#allocation3 + $0x10] sm:$0xf] %v995_v26 }
  0xe6   : > { %v867_v30 = vadd.f32 %v2970_v19, %v836_v29  ;;  %1040 = vst [vmem:[#allocation3 + $0x14] sm:$0xf] %v1031_v27 }
  0xe8   : > { %v894_v31 = vmax.f32 %v867_v30, 0.0 }
  0xea   : > { %921 = vst [vmem:[#allocation2 + $0x38] sm:$0xff] %v894_v31  ;;  %v851_v31 = vmul.f32 %v2965_v18, %v811_v17 }
  0xeb   : > { %v776_v32 = vpop.f32.mrf.mxu0  ;;  %v2685_v34 = vld [vmem:[#allocation3 + $0x8] sm:$0xf0] }
  0xec   : > { %v837_v35 = vmul.f32 %v2965_v18, %v776_v32  ;;  %v2315_v36 = vor.u32 %v2685_v34, %v2314_v33  ;;  %v2316_v38 = vld [vmem:[#allocation3 + $0xc] sm:$0xf0]  ;;  %v882_v33 = vadd.f32 %v2970_v19, %v851_v31  ;;  %v813_v34 = vpop.f32.mrf.mxu2 }
  0xed   : > { %v2319_v39 = vor.u32 %v2684_v37, %v2316_v38  ;;  %v2686_v41 = vld [vmem:[#allocation3 + $0x10] sm:$0xf0] }
  0xee   : > { %v868_v42 = vadd.f32 %v2970_v19, %v837_v35  ;;  %1341 = vmatmul.bf16.vlgmr.msra.gmra.mxu1 %v2315_v36  ;;  %v2323_v43 = vor.u32 %v2686_v41, %v2322_v40  ;;  %v852_v36 = vmul.f32 %v2965_v18, %v813_v34  ;;  %v909_v37 = vmax.f32 %v882_v33, 0.0 }
  0xef   : > { %1374 = vmatmul.bf16.vlgmr.msrb.gmra.mxu2 %v2319_v39 }
  0xf0   : > { %v895_v44 = vmax.f32 %v868_v42, 0.0  ;;  %1407 = vmatmul.bf16.vlgmr.msra.gmra.mxu3 %v2323_v43  ;;  %v883_v39 = vadd.f32 %v2970_v19, %v852_v36  ;;  %936 = vst [vmem:[#allocation2 + $0xb0] sm:$0xff] %v909_v37 }
  0xf2   : > { %922 = vst [vmem:[#allocation2 + $0x40] sm:$0xff] %v895_v44  ;;  %v910_v41 = vmax.f32 %v883_v39, 0.0 }
  0xf3   : > { %v778_v45 = vpop.f32.mrf.mxu0 }
  0xf4   : > { %v838_v46 = vmul.f32 %v2965_v18, %v778_v45  ;;  %937 = vst [vmem:[#allocation2 + $0xb8] sm:$0xff] %v910_v41 }
  0xf6   : > { %v869_v47 = vadd.f32 %v2970_v19, %v838_v46 }
  0xf8   : > { %v896_v48 = vmax.f32 %v869_v47, 0.0 }
  0xf9   : > { %v945_v49 = vld [vmem:[#allocation2 + $0x30] ss:$3 sm:$0xff]  ;;  %v3076_v50 = vld [vmem:[#allocation2 + $0x31] ss:$3 sm:$0xff]  ;;  %v1017_v51 = vld [vmem:[#allocation2 + $0x32] ss:$3 sm:$0xff] }
  0xfa   : > { %923 = vst [vmem:[#allocation2 + $0x48] sm:$0xff] %v896_v48  ;;  %v960_v52 = vpack.c.bf16 %v945_v49, %v945_v49  ;;  %v996_v53 = vpack.c.bf16 %v3076_v50, %v3076_v50  ;;  %v1032_v54 = vpack.c.bf16 %v1017_v51, %v1017_v51  ;;  %v816_v49 = vpop.f32.mrf.mxu2 }
  0xfb   : > { %v781_v55 = vpop.f32.mrf.mxu0 }
  0xfc   : > { %v839_v56 = vmul.f32 %v2965_v18, %v781_v55  ;;  %969 = vst [vmem:[#allocation3 + $0x18] sm:$0xf] %v960_v52  ;;  %v853_v52 = vmul.f32 %v2965_v18, %v816_v49 }
  0xfd   : > { %1005 = vst [vmem:[#allocation3 + $0x1c] sm:$0xf] %v996_v53 }
  0xfe   : > { %v870_v57 = vadd.f32 %v2970_v19, %v839_v56  ;;  %1041 = vst [vmem:[#allocation3 + $0x20] sm:$0xf] %v1032_v54  ;;  %v884_v54 = vadd.f32 %v2970_v19, %v853_v52 }
 0x100   : > { %v897_v58 = vmax.f32 %v870_v57, 0.0  ;;  %v911_v56 = vmax.f32 %v884_v54, 0.0 }
 0x102   : > { %924 = vst [vmem:[#allocation2 + $0x50] sm:$0xff] %v897_v58  ;;  %v818_v58 = vpop.f32.mrf.mxu2 }
 0x103   : > { %v783_v59 = vpop.f32.mrf.mxu0  ;;  %v2326_v15 = vld [vmem:[#allocation3 + $0x18] sm:$0xf]  ;;  %938 = vst [vmem:[#allocation2 + $0xc0] sm:$0xff] %v911_v56 }
 0x104   : > { %v840_v60 = vmul.f32 %v2965_v18, %v783_v59  ;;  %v2687_v22 = vld [vmem:[#allocation3 + $0x1c] sm:$0xf] }
 0x105   : > { %v2334_v26 = vld [vmem:[#allocation3 + $0x20] sm:$0xf] }
 0x106   : > { %v871_v61 = vadd.f32 %v2970_v19, %v840_v60 }
 0x108   : > { %v898_v62 = vmax.f32 %v871_v61, 0.0 }
 0x10a   : > { %925 = vst [vmem:[#allocation2 + $0x58] sm:$0xff] %v898_v62  ;;  %v854_v62 = vmul.f32 %v2965_v18, %v818_v58 }
 0x10b   : > { %v786_v63 = vpop.f32.mrf.mxu0 }
 0x10c   : > { %v841_v1 = vmul.f32 %v2965_v18, %v786_v63 }
 0x10e   : > { %v872_v2 = vadd.f32 %v2970_v19, %v841_v1  ;;  %v885_v1 = vadd.f32 %v2970_v19, %v854_v62 }
 0x110   : > { %v899_v3 = vmax.f32 %v872_v2, 0.0  ;;  %v821_v2 = vpop.f32.mrf.mxu2 }
 0x111   : > { %v3086_v4 = vld [vmem:[#allocation2 + $0x49] ss:$3 sm:$0xff]  ;;  %v947_v5 = vld [vmem:[#allocation2 + $0x48] ss:$3 sm:$0xff]  ;;  %v1019_v6 = vld [vmem:[#allocation2 + $0x4a] ss:$3 sm:$0xff] }
 0x112   : > { %926 = vst [vmem:[#allocation2 + $0x60] sm:$0xff] %v899_v3  ;;  %v961_v7 = vpack.c.bf16 %v947_v5, %v947_v5  ;;  %v997_v8 = vpack.c.bf16 %v3086_v4, %v3086_v4  ;;  %v1033_v9 = vpack.c.bf16 %v1019_v6, %v1019_v6  ;;  %v855_v5 = vmul.f32 %v2965_v18, %v821_v2  ;;  %v2722_v2 = vld [vmem:[%s3391_s7 + $0x10] sm:$0xff] }
 0x113   : > { %v788_v10 = vpop.f32.mrf.mxu0  ;;  %v912_v6 = vmax.f32 %v885_v1, 0.0 }
 0x114   : > { %v842_v11 = vmul.f32 %v2965_v18, %v788_v10  ;;  %970 = vst [vmem:[#allocation3 + $0x24] sm:$0xf] %v961_v7 }
 0x115   : > { %1006 = vst [vmem:[#allocation3 + $0x28] sm:$0xf] %v997_v8  ;;  %v886_v8 = vadd.f32 %v2970_v19, %v855_v5  ;;  %v2720_v5 = vld [vmem:[%s3391_s7] sm:$0xff] }
 0x116   : > { %v873_v12 = vadd.f32 %v2970_v19, %v842_v11  ;;  %1042 = vst [vmem:[#allocation3 + $0x2c] sm:$0xf] %v1033_v9 }
 0x117   : > { %939 = vst [vmem:[#allocation2 + $0xc8] sm:$0xff] %v912_v6  ;;  %v913_v10 = vmax.f32 %v886_v8, 0.0 }
 0x118   : > { %v900_v13 = vmax.f32 %v873_v12, 0.0 }
 0x119   : > { %940 = vst [vmem:[#allocation2 + $0xd0] sm:$0xff] %v913_v10 }
 0x11a   : > { %927 = vst [vmem:[#allocation2 + $0x68] sm:$0xff] %v900_v13 }
 0x11b   : > { %v791_v14 = vpop.f32.mrf.mxu0  ;;  %v2688_v16 = vld [vmem:[#allocation3 + $0x20] sm:$0xf0] }
 0x11c   : > { %v843_v20 = vmul.f32 %v2965_v18, %v791_v14  ;;  %v2327_v21 = vor.u32 %v2688_v16, %v2326_v15  ;;  %v2328_v24 = vld [vmem:[#allocation3 + $0x24] sm:$0xf0] }
 0x11d   : > { %v2331_v25 = vor.u32 %v2687_v22, %v2328_v24  ;;  %v2689_v27 = vld [vmem:[#allocation3 + $0x28] sm:$0xf0] }
 0x11e   : > { %v874_v28 = vadd.f32 %v2970_v19, %v843_v20  ;;  %1346 = vmatmul.bf16.gmra.mxu1 %v2327_v21  ;;  %v2335_v29 = vor.u32 %v2689_v27, %v2334_v26  ;;  %v823_v20 = vpop.f32.mrf.mxu2 }
 0x11f   : > { %1379 = vmatmul.bf16.gmra.mxu2 %v2331_v25 }
 0x120   : > { %v901_v30 = vmax.f32 %v874_v28, 0.0  ;;  %1412 = vmatmul.bf16.gmra.mxu3 %v2335_v29  ;;  %v957_v25 = vld [vmem:[#allocation2 + $0xc0] ss:$3 sm:$0xff]  ;;  %v3122_v26 = vld [vmem:[#allocation2 + $0xc1] ss:$3 sm:$0xff] }
 0x121   : > { %v1002_v31 = vpack.c.bf16 %v3122_v26, %v3122_v26 }
 0x122   : > { %928 = vst [vmem:[#allocation2 + $0x70] sm:$0xff] %v901_v30  ;;  %v966_v30 = vpack.c.bf16 %v957_v25, %v957_v25 }
 0x123   : > { %v793_v32 = vpop.f32.mrf.mxu0  ;;  %1011 = vst [vmem:[#allocation3 + $0x64] sm:$0xf] %v1002_v31 }
 0x124   : > { %v844_v35 = vmul.f32 %v2965_v18, %v793_v32  ;;  %v1029_v32 = vld [vmem:[#allocation2 + $0xc2] ss:$3 sm:$0xff]  ;;  %975 = vst [vmem:[#allocation3 + $0x60] sm:$0xf] %v966_v30 }
 0x125   : > { %v1038_v37 = vpack.c.bf16 %v1029_v32, %v1029_v32 }
 0x126   : > { %v875_v38 = vadd.f32 %v2970_v19, %v844_v35 }
 0x127   : > { %1047 = vst [vmem:[#allocation3 + $0x68] sm:$0xf] %v1038_v37  ;;  %v3165_v37 = vld [vmem:[%s3389_s5] ss:$0 sm:$0xff] }
 0x128   : > { %v902_v40 = vmax.f32 %v875_v38, 0.0 }
 0x129   : > { %v3100_v42 = vld [vmem:[#allocation2 + $0x61] ss:$3 sm:$0xff]  ;;  %v949_v43 = vld [vmem:[#allocation2 + $0x60] ss:$3 sm:$0xff]  ;;  %v1021_v44 = vld [vmem:[#allocation2 + $0x62] ss:$3 sm:$0xff] }
 0x12a   : > { %929 = vst [vmem:[#allocation2 + $0x78] sm:$0xff] %v902_v40  ;;  %v962_v45 = vpack.c.bf16 %v949_v43, %v949_v43  ;;  %v998_v46 = vpack.c.bf16 %v3100_v42, %v3100_v42  ;;  %v1034_v47 = vpack.c.bf16 %v1021_v44, %v1021_v44  ;;  %v2727_v44 = vld [vmem:[%s3391_s7 + $0x38] sm:$0xff] }
 0x12b   : > { %v796_v48 = vpop.f32.mrf.mxu0  ;;  %1536 = vmatpush.bf16.msrb.mxu1 %v2727_v44 }
 0x12c   : > { %v845_v51 = vmul.f32 %v2965_v18, %v796_v48  ;;  %971 = vst [vmem:[#allocation3 + $0x30] sm:$0xf] %v962_v45 }
 0x12d   : > { %1007 = vst [vmem:[#allocation3 + $0x34] sm:$0xf] %v998_v46 }
 0x12e   : > { %v876_v53 = vadd.f32 %v2970_v19, %v845_v51  ;;  %1043 = vst [vmem:[#allocation3 + $0x38] sm:$0xf] %v1034_v47  ;;  %v2726_v47 = vld [vmem:[%s3391_s7 + $0x30] sm:$0xff]  ;;  %v2725_v51 = vld [vmem:[%s3391_s7 + $0x28] sm:$0xff] }
 0x12f   : > { %1537 = vmatpush.bf16.msrb.mxu1 %v2726_v47 }
 0x130   : > { %v903_v55 = vmax.f32 %v876_v53, 0.0 }
 0x132   : > { %930 = vst [vmem:[#allocation2 + $0x80] sm:$0xff] %v903_v55 }
 0x133   : > { %v798_v57 = vpop.f32.mrf.mxu0  ;;  %v2338_v28 = vld [vmem:[#allocation3 + $0x30] sm:$0xf]  ;;  %1538 = vmatpush.bf16.msrb.mxu1 %v2725_v51 }
 0x134   : > { %v846_v59 = vmul.f32 %v2965_v18, %v798_v57  ;;  %v2690_v35 = vld [vmem:[#allocation3 + $0x34] sm:$0xf] }
 0x135   : > { %v2346_v39 = vld [vmem:[#allocation3 + $0x38] sm:$0xf] }
 0x136   : > { %v877_v60 = vadd.f32 %v2970_v19, %v846_v59 }
 0x138   : > { %v904_v61 = vmax.f32 %v877_v60, 0.0 }
 0x13a   : > { %931 = vst [vmem:[#allocation2 + $0x88] sm:$0xff] %v904_v61 }
 0x13b   : > { %v801_v63 = vpop.f32.mrf.mxu0 }
 0x13c   : > { %v847_v3 = vmul.f32 %v2965_v18, %v801_v63 }
 0x13e   : > { %v878_v7 = vadd.f32 %v2970_v19, %v847_v3  ;;  %v2721_v3 = vld [vmem:[%s3391_s7 + $0x8] sm:$0xff] }
 0x140   : > { %v905_v9 = vmax.f32 %v878_v7, 0.0 }
 0x141   : > { %v3116_v11 = vld [vmem:[#allocation2 + $0x79] ss:$3 sm:$0xff]  ;;  %v951_v12 = vld [vmem:[#allocation2 + $0x78] ss:$3 sm:$0xff]  ;;  %v1023_v13 = vld [vmem:[#allocation2 + $0x7a] ss:$3 sm:$0xff] }
 0x142   : > { %932 = vst [vmem:[#allocation2 + $0x90] sm:$0xff] %v905_v9  ;;  %v963_v14 = vpack.c.bf16 %v951_v12, %v951_v12  ;;  %v999_v15 = vpack.c.bf16 %v3116_v11, %v3116_v11  ;;  %v1035_v16 = vpack.c.bf16 %v1023_v13, %v1023_v13 }
 0x143   : > { %v803_v17 = vpop.f32.mrf.mxu0 }
 0x144   : > { %v848_v21 = vmul.f32 %v2965_v18, %v803_v17  ;;  %972 = vst [vmem:[#allocation3 + $0x3c] sm:$0xf] %v963_v14 }
 0x145   : > { %1008 = vst [vmem:[#allocation3 + $0x40] sm:$0xf] %v999_v15 }
 0x146   : > { %v879_v22 = vadd.f32 %v2970_v19, %v848_v21  ;;  %1044 = vst [vmem:[#allocation3 + $0x44] sm:$0xf] %v1035_v16  ;;  %v1064_v21 = vld [vmem:[#allocation3 + $0x60] sm:$0xff] }
 0x147   : > { %v1157_v25 = vunpack.c.h.b16 %v1064_v21 }
 0x148   : > { %v906_v24 = vmax.f32 %v879_v22, 0.0  ;;  %v1065_v22 = vld [vmem:[#allocation3 + $0x68] sm:$0xf] }
 0x149   : > { %v1158_v30 = vunpack.c.l.b16 %v1065_v22 }
 0x14a   : > { %933 = vst [vmem:[#allocation2 + $0x98] sm:$0xff] %v906_v24  ;;  %v1156_v24 = vunpack.c.l.b16 %v1064_v21 }
 0x14b   : > { %v806_v27 = vpop.f32.mrf.mxu0  ;;  %v2691_v29 = vld [vmem:[#allocation3 + $0x38] sm:$0xf0] }
 0x14c   : > { %v849_v33 = vmul.f32 %v2965_v18, %v806_v27  ;;  %v2339_v34 = vor.u32 %v2691_v29, %v2338_v28  ;;  %v2340_v36 = vld [vmem:[#allocation3 + $0x3c] sm:$0xf0] }
 0x14d   : > { %v2343_v38 = vor.u32 %v2690_v35, %v2340_v36  ;;  %v2692_v40 = vld [vmem:[#allocation3 + $0x40] sm:$0xf0]  ;;  %v1172_v35 = vpack.c.b16 %v1157_v25, %v1157_v25 }
 0x14e   : > { %v880_v41 = vadd.f32 %v2970_v19, %v849_v33  ;;  %1351 = vmatmul.bf16.gmra.mxu1 %v2339_v34  ;;  %v2347_v43 = vor.u32 %v2692_v40, %v2346_v39  ;;  %v1171_v33 = vpack.c.b16 %v1156_v24, %v1156_v24 }
 0x14f   : > { %1384 = vmatmul.bf16.gmra.mxu2 %v2343_v38  ;;  %v1173_v38 = vpack.c.b16 %v1158_v30, %v1158_v30 }
 0x150   : > { %v907_v45 = vmax.f32 %v880_v41, 0.0  ;;  %1417 = vmatmul.bf16.gmra.mxu3 %v2347_v43  ;;  %v3172_v41 = vld [vmem:[%s3390_s6] ss:$0 sm:$0xff] }
 0x152   : > { %934 = vst [vmem:[#allocation2 + $0xa0] sm:$0xff] %v907_v45 }
 0x153   : > { %v808_v46 = vpop.f32.mrf.mxu0 }
 0x154   : > { %v850_v48 = vmul.f32 %v2965_v18, %v808_v46  ;;  %v2724_v18 = vld [vmem:[%s3391_s7 + $0x20] sm:$0xff] }
 0x155   : > { %1539 = vmatpush.bf16.msrb.mxu1 %v2724_v18 }
 0x156   : > { %v881_v49 = vadd.f32 %v2970_v19, %v850_v48  ;;  %v2723_v19 = vld [vmem:[%s3391_s7 + $0x18] sm:$0xff] }
 0x158   : > { %v908_v52 = vmax.f32 %v881_v49, 0.0 }
 0x159   : > { %v3139_v53 = vld [vmem:[#allocation2 + $0x91] ss:$3 sm:$0xff]  ;;  %v953_v54 = vld [vmem:[#allocation2 + $0x90] ss:$3 sm:$0xff]  ;;  %v1025_v55 = vld [vmem:[#allocation2 + $0x92] ss:$3 sm:$0xff]  ;;  %1540 = vmatpush.bf16.msrb.mxu1 %v2723_v19 }
 0x15a   : > { %935 = vst [vmem:[#allocation2 + $0xa8] sm:$0xff] %v908_v52  ;;  %v964_v56 = vpack.c.bf16 %v953_v54, %v953_v54  ;;  %v1000_v57 = vpack.c.bf16 %v3139_v53, %v3139_v53  ;;  %v1036_v58 = vpack.c.bf16 %v1025_v55, %v1025_v55 }
 0x15c   : > { %973 = vst [vmem:[#allocation3 + $0x48] sm:$0xf] %v964_v56 }
 0x15d   : > { %1009 = vst [vmem:[#allocation3 + $0x4c] sm:$0xf] %v1000_v57  ;;  %1541 = vmatpush.bf16.msrb.mxu1 %v2722_v2 }
 0x15e   : > { %1045 = vst [vmem:[#allocation3 + $0x50] sm:$0xf] %v1036_v58 }
 0x161   : > { %v3149_v59 = vld [vmem:[#allocation2 + $0xa9] ss:$3 sm:$0xff]  ;;  %v955_v60 = vld [vmem:[#allocation2 + $0xa8] ss:$3 sm:$0xff]  ;;  %v1027_v61 = vld [vmem:[#allocation2 + $0xaa] ss:$3 sm:$0xff]  ;;  %1542 = vmatpush.bf16.msrb.mxu1 %v2721_v3 }
 0x162   : > { %v965_v62 = vpack.c.bf16 %v955_v60, %v955_v60  ;;  %v1001_v63 = vpack.c.bf16 %v3149_v59, %v3149_v59  ;;  %v1037_v1 = vpack.c.bf16 %v1027_v61, %v1027_v61 }
 0x163   : > { %v2350_v6 = vld [vmem:[#allocation3 + $0x48] sm:$0xf] }
 0x164   : > { %974 = vst [vmem:[#allocation3 + $0x54] sm:$0xf] %v965_v62  ;;  %v2693_v9 = vld [vmem:[#allocation3 + $0x4c] sm:$0xf] }
 0x165   : > { %1010 = vst [vmem:[#allocation3 + $0x58] sm:$0xf] %v1001_v63  ;;  %v2358_v13 = vld [vmem:[#allocation3 + $0x50] sm:$0xf]  ;;  %1543 = vmatpush.bf16.msrb.mxu1 %v2720_v5 }
 0x166   : > { %1046 = vst [vmem:[#allocation3 + $0x5c] sm:$0xf] %v1037_v1 }
 0x16b   : > { %v2694_v7 = vld [vmem:[#allocation3 + $0x50] sm:$0xf0]  ;;  %v1342_v16 = vpop.f32.mrf.mxu1 }
 0x16c   : > { %v2351_v8 = vor.u32 %v2694_v7, %v2350_v6  ;;  %v2352_v10 = vld [vmem:[#allocation3 + $0x54] sm:$0xf0] }
 0x16d   : > { %v2355_v12 = vor.u32 %v2693_v9, %v2352_v10  ;;  %v2695_v14 = vld [vmem:[#allocation3 + $0x58] sm:$0xf0] }
 0x16e   : > { %1356 = vmatmul.bf16.gmra.mxu1 %v2351_v8  ;;  %v2359_v15 = vor.u32 %v2695_v14, %v2358_v13 }
 0x16f   : > { %1389 = vmatmul.bf16.gmra.mxu2 %v2355_v12 }
 0x170   : > { %1422 = vmatmul.bf16.gmra.mxu3 %v2359_v15 }
 0x172   : > { %v1375_v17 = vpop.f32.mrf.mxu2 }
 0x173   : > { %v1408_v20 = vpop.f32.mrf.mxu3  ;;  %v1376_v27 = vadd.f32 %v1375_v17, %v1342_v16  ;;  %v1344_v28 = vpop.f32.mrf.mxu1 }
 0x175   : > { %v1409_v36 = vadd.f32 %v1408_v20, %v1376_v27 }
 0x177   : > { %v1436_v40 = vmul.f32 %v3165_v37, %v1409_v36 }
 0x179   : > { %v1449_v44 = vadd.f32 %v3172_v41, %v1436_v40 }
 0x17a   : > { %v1377_v29 = vpop.f32.mrf.mxu2 }
 0x17b   : > { %v1378_v31 = vadd.f32 %v1377_v29, %v1344_v28  ;;  %v1410_v32 = vpop.f32.mrf.mxu3  ;;  %v1458_v46 = vmax.f32 %v1449_v44, 0.0 }
 0x17d   : > { %v1411_v34 = vadd.f32 %v1410_v32, %v1378_v31 }
 0x17e   : > { %1361 = vmatmul.bf16.gmra.mxu1 %v1171_v33 }
 0x17f   : > { %1394 = vmatmul.bf16.gmra.mxu2 %v1172_v35  ;;  %v1437_v39 = vmul.f32 %v3165_v37, %v1411_v34 }
 0x180   : > { %1427 = vmatmul.bf16.gmra.mxu3 %v1173_v38 }
 0x181   : > { %v1450_v43 = vadd.f32 %v3172_v41, %v1437_v39 }
 0x183   : > { %v1459_v45 = vmax.f32 %v1450_v43, 0.0 }
 0x185   : > { %v1467_v47 = vpack.c.bf16 %v1459_v45, %v1458_v46 }
 0x18e   : > { %1544 = vmatmul.bf16.vlgmr.msrb.gmra.mxu1 %v1467_v47 }
 0x19b   : > { %v1347_v48 = vpop.f32.mrf.mxu1 }
 0x1a2   : > { %v1380_v49 = vpop.f32.mrf.mxu2 }
 0x1a3   : > { %v1381_v51 = vadd.f32 %v1380_v49, %v1347_v48  ;;  %v1413_v52 = vpop.f32.mrf.mxu3  ;;  %v1349_v55 = vpop.f32.mrf.mxu1 }
 0x1a5   : > { %v1414_v54 = vadd.f32 %v1413_v52, %v1381_v51 }
 0x1a7   : > { %v1438_v57 = vmul.f32 %v3165_v37, %v1414_v54  ;;  %v3191_v54 = vld [vmem:[%s3392_s8] ss:$0 sm:$0xff] }
 0x1a9   : > { %v1451_v61 = vadd.f32 %v3172_v41, %v1438_v57  ;;  %v3197_v57 = vld [vmem:[%s3393_s9] ss:$0 sm:$0xff] }
 0x1aa   : > { %v1382_v56 = vpop.f32.mrf.mxu2 }
 0x1ab   : > { %v1383_v58 = vadd.f32 %v1382_v56, %v1349_v55  ;;  %v1415_v18 = vpop.f32.mrf.mxu3  ;;  %v1460_v63 = vmax.f32 %v1451_v61, 0.0 }
 0x1ad   : > { %v1416_v19 = vadd.f32 %v1415_v18, %v1383_v58 }
 0x1af   : > { %v1439_v60 = vmul.f32 %v3165_v37, %v1416_v19 }
 0x1b1   : > { %v1452_v62 = vadd.f32 %v3172_v41, %v1439_v60 }
 0x1b3   : > { %v1461_v1 = vmax.f32 %v1452_v62, 0.0 }
 0x1b5   : > { %v1468_v2 = vpack.c.bf16 %v1461_v1, %v1460_v63 }
 0x1b7   : > { %1549 = vmatmul.bf16.gmra.mxu1 %v1468_v2 }
 0x1cb   : > { %v1352_v3 = vpop.f32.mrf.mxu1 }
 0x1d2   : > { %v1385_v5 = vpop.f32.mrf.mxu2 }
 0x1d3   : > { %v1386_v6 = vadd.f32 %v1385_v5, %v1352_v3  ;;  %v1418_v7 = vpop.f32.mrf.mxu3  ;;  %v1354_v9 = vpop.f32.mrf.mxu1 }
 0x1d5   : > { %v1419_v8 = vadd.f32 %v1418_v7, %v1386_v6 }
 0x1d7   : > { %v1440_v12 = vmul.f32 %v3165_v37, %v1419_v8 }
 0x1d9   : > { %v1453_v17 = vadd.f32 %v3172_v41, %v1440_v12 }
 0x1da   : > { %v1387_v10 = vpop.f32.mrf.mxu2 }
 0x1db   : > { %v1388_v13 = vadd.f32 %v1387_v10, %v1354_v9  ;;  %v1420_v14 = vpop.f32.mrf.mxu3  ;;  %v1462_v21 = vmax.f32 %v1453_v17, 0.0 }
 0x1dd   : > { %v1421_v15 = vadd.f32 %v1420_v14, %v1388_v13 }
 0x1df   : > { %v1441_v16 = vmul.f32 %v3165_v37, %v1421_v15 }
 0x1e1   : > { %v1454_v20 = vadd.f32 %v3172_v41, %v1441_v16 }
 0x1e3   : > { %v1463_v22 = vmax.f32 %v1454_v20, 0.0 }
 0x1e5   : > { %v1469_v24 = vpack.c.bf16 %v1463_v22, %v1462_v21 }
 0x1e7   : > { %1554 = vmatmul.bf16.gmra.mxu1 %v1469_v24 }
 0x1eb   : > { %v1357_v25 = vpop.f32.mrf.mxu1 }
 0x1f2   : > { %v1390_v27 = vpop.f32.mrf.mxu2 }
 0x1f3   : > { %v1391_v28 = vadd.f32 %v1390_v27, %v1357_v25  ;;  %v1423_v29 = vpop.f32.mrf.mxu3  ;;  %v1359_v30 = vpop.f32.mrf.mxu1  ;;  %v2737_v27 = vld [vmem:[%s3394_s10 + $0x30] sm:$0xff] }
 0x1f5   : > { %v1424_v31 = vadd.f32 %v1423_v29, %v1391_v28  ;;  %v2745_v28 = vld [vmem:[%s3394_s10 + $0x70] sm:$0xff] }
 0x1f6   : > { %v2753_v29 = vld [vmem:[%s3394_s10 + $0xb0] sm:$0xff] }
 0x1f7   : > { %v1442_v33 = vmul.f32 %v3165_v37, %v1424_v31  ;;  %v2744_v31 = vld [vmem:[%s3394_s10 + $0x68] sm:$0xff] }
 0x1f9   : > { %v1455_v40 = vadd.f32 %v3172_v41, %v1442_v33  ;;  %v2735_v33 = vld [vmem:[%s3394_s10 + $0x20] sm:$0xff] }
 0x1fa   : > { %v1392_v32 = vpop.f32.mrf.mxu2 }
 0x1fb   : > { %v1393_v34 = vadd.f32 %v1392_v32, %v1359_v30  ;;  %v1425_v35 = vpop.f32.mrf.mxu3  ;;  %v1362_v36 = vpop.f32.mrf.mxu1  ;;  %v1464_v48 = vmax.f32 %v1455_v40, 0.0  ;;  %v2736_v30 = vld [vmem:[%s3394_s10 + $0x28] sm:$0xff]  ;;  %v2733_v40 = vld [vmem:[%s3394_s10 + $0x10] sm:$0xff] }
 0x1fc   : > { %v2752_v32 = vld [vmem:[%s3394_s10 + $0xa8] sm:$0xff] }
 0x1fd   : > { %v1426_v38 = vadd.f32 %v1425_v35, %v1393_v34  ;;  %v2743_v34 = vld [vmem:[%s3394_s10 + $0x60] sm:$0xff] }
 0x1fe   : > { %v2751_v35 = vld [vmem:[%s3394_s10 + $0xa0] sm:$0xff] }
 0x1ff   : > { %v1443_v39 = vmul.f32 %v3165_v37, %v1426_v38  ;;  %v2742_v38 = vld [vmem:[%s3394_s10 + $0x58] sm:$0xff] }
 0x201   : > { %v1456_v43 = vadd.f32 %v3172_v41, %v1443_v39  ;;  %v2750_v39 = vld [vmem:[%s3394_s10 + $0x98] sm:$0xff] }
 0x202   : > { %v1395_v44 = vpop.f32.mrf.mxu2 }
 0x203   : > { %v1396_v45 = vadd.f32 %v1395_v44, %v1362_v36  ;;  %v1428_v46 = vpop.f32.mrf.mxu3  ;;  %v1364_v47 = vpop.f32.mrf.mxu1  ;;  %v1465_v49 = vmax.f32 %v1456_v43, 0.0  ;;  %v2734_v36 = vld [vmem:[%s3394_s10 + $0x18] sm:$0xff]  ;;  %v2741_v43 = vld [vmem:[%s3394_s10 + $0x50] sm:$0xff] }
 0x204   : > { %v2749_v44 = vld [vmem:[%s3394_s10 + $0x90] sm:$0xff]  ;;  %v2748_v47 = vld [vmem:[%s3394_s10 + $0x88] sm:$0xff] }
 0x205   : > { %v1429_v51 = vadd.f32 %v1428_v46, %v1396_v45  ;;  %v1470_v52 = vpack.c.bf16 %v1465_v49, %v1464_v48  ;;  %v2732_v45 = vld [vmem:[%s3394_s10 + $0x8] sm:$0xff] }
 0x206   : > { %v2740_v46 = vld [vmem:[%s3394_s10 + $0x48] sm:$0xff] }
 0x207   : > { %1559 = vmatmul.bf16.gmra.mxu1 %v1470_v52  ;;  %v1444_v55 = vmul.f32 %v3165_v37, %v1429_v51  ;;  %v2731_v51 = vld [vmem:[%s3394_s10] sm:$0xff] }
 0x208   : > { %v2739_v52 = vld [vmem:[%s3394_s10 + $0x40] sm:$0xff] }
 0x209   : > { %v1457_v60 = vadd.f32 %v3172_v41, %v1444_v55  ;;  %v2738_v41 = vld [vmem:[%s3394_s10 + $0x38] sm:$0xff]  ;;  %v2747_v55 = vld [vmem:[%s3394_s10 + $0x80] sm:$0xff] }
 0x20a   : > { %v1397_v56 = vpop.f32.mrf.mxu2  ;;  %1876 = vmatpush.bf16.msra.mxu2 %v2738_v41 }
 0x20b   : > { %v1430_v58 = vpop.f32.mrf.mxu3  ;;  %v1545_v18 = vpop.f32.mrf.mxu1  ;;  %v1466_v63 = vmax.f32 %v1457_v60, 0.0 }
 0x20c   : > { %v1573_v19 = vmul.f32 %v3191_v54, %v1545_v18 }
 0x20d   : > { %v1471_v3 = vpack.c.bf16 %v1466_v63, %v1466_v63 }
 0x20e   : > { %v1586_v61 = vadd.f32 %v3197_v57, %v1573_v19  ;;  %1877 = vmatpush.bf16.msra.mxu2 %v2737_v27 }
 0x210   : > { %v1595_v62 = vmax.f32 %v1586_v61, 0.0 }
 0x212   : > { %v1604_v1 = vadd.f32 %v1595_v62, %v3047_v0  ;;  %1878 = vmatpush.bf16.msra.mxu2 %v2736_v30 }
 0x213   : > { %v1547_v2 = vpop.f32.mrf.mxu1 }
 0x214   : > { %1613 = vst [vmem:[#allocation2] sm:$0xff] %v1604_v1  ;;  %v1574_v37 = vmul.f32 %v3191_v54, %v1547_v2 }
 0x216   : > { %v1587_v5 = vadd.f32 %v3197_v57, %v1574_v37  ;;  %1879 = vmatpush.bf16.msra.mxu2 %v2735_v33 }
 0x217   : > { %1564 = vmatmul.bf16.gmra.mxu1 %v1471_v3 }
 0x218   : > { %v1596_v6 = vmax.f32 %v1587_v5, 0.0 }
 0x21a   : > { %v1605_v7 = vadd.f32 %v1596_v6, %v3066_v23  ;;  %1880 = vmatpush.bf16.msra.mxu2 %v2734_v36 }
 0x21c   : > { %1614 = vst [vmem:[#allocation2 + $0x8] sm:$0xff] %v1605_v7 }
 0x21e   : > { %1881 = vmatpush.bf16.msra.mxu2 %v2733_v40 }
 0x222   : > { %1882 = vmatpush.bf16.msra.mxu2 %v2732_v45  ;;  %v2760_v45 = vld [vmem:[%s3397_s13 + $0x28] sm:$0xff] }
 0x226   : > { %1883 = vmatpush.bf16.msra.mxu2 %v2731_v51  ;;  %v2755_v51 = vld [vmem:[%s3397_s13] sm:$0xff] }
 0x234   : > { %v1550_v8 = vpop.f32.mrf.mxu1 }
 0x235   : > { %v1575_v0 = vmul.f32 %v3191_v54, %v1550_v8 }
 0x237   : > { %v1588_v9 = vadd.f32 %v3197_v57, %v1575_v0 }
 0x239   : > { %v1597_v10 = vmax.f32 %v1588_v9, 0.0 }
 0x23b   : > { %v1606_v12 = vadd.f32 %v1597_v10, %v3076_v50  ;;  %v2746_v50 = vld [vmem:[%s3394_s10 + $0x78] sm:$0xff] }
 0x23c   : > { %v1552_v13 = vpop.f32.mrf.mxu1  ;;  %1894 = vmatpush.bf16.msrb.mxu3 %v2746_v50 }
 0x23d   : > { %1615 = vst [vmem:[#allocation2 + $0x10] sm:$0xff] %v1606_v12  ;;  %v1576_v14 = vmul.f32 %v3191_v54, %v1552_v13 }
 0x23f   : > { %v1589_v23 = vadd.f32 %v3197_v57, %v1576_v14 }
 0x240   : > { %1895 = vmatpush.bf16.msrb.mxu3 %v2745_v28 }
 0x241   : > { %v1598_v15 = vmax.f32 %v1589_v23, 0.0 }
 0x243   : > { %v1607_v16 = vadd.f32 %v1598_v15, %v3086_v4  ;;  %v2754_v4 = vld [vmem:[%s3394_s10 + $0xb8] sm:$0xff] }
 0x244   : > { %v1622_v17 = vld [vmem:[#allocation2] ss:$3 sm:$0xff]  ;;  %v3215_v20 = vld [vmem:[#allocation2 + $0x1] ss:$3 sm:$0xff]  ;;  %v1642_v21 = vld [vmem:[#allocation2 + $0x2] ss:$3 sm:$0xff]  ;;  %1912 = vmatpush.bf16.msra.mxu1 %v2754_v4  ;;  %1896 = vmatpush.bf16.msrb.mxu3 %v2744_v31 }
 0x245   : > { %1616 = vst [vmem:[#allocation2 + $0x18] sm:$0xff] %v1607_v16  ;;  %v1627_v22 = vpack.c.bf16 %v1622_v17, %v1622_v17  ;;  %v1636_v24 = vpack.c.bf16 %v3215_v20, %v3215_v20  ;;  %v1645_v25 = vpack.c.bf16 %v1642_v21, %v1642_v21  ;;  %2779 = vmatpush.bf16.msrb.mxu2 %v2754_v4 }
 0x247   : > { %1630 = vst [vmem:[#allocation3] sm:$0xf] %v1627_v22 }
 0x248   : > { %1639 = vst [vmem:[#allocation3 + $0x4] sm:$0xf] %v1636_v24  ;;  %1913 = vmatpush.bf16.msra.mxu1 %v2753_v29  ;;  %1897 = vmatpush.bf16.msrb.mxu3 %v2743_v34 }
 0x249   : > { %1648 = vst [vmem:[#allocation3 + $0x8] sm:$0xf] %v1645_v25  ;;  %2780 = vmatpush.bf16.msrb.mxu2 %v2753_v29 }
 0x24c   : > { %1914 = vmatpush.bf16.msra.mxu1 %v2752_v32  ;;  %1898 = vmatpush.bf16.msrb.mxu3 %v2742_v38 }
 0x24d   : > { %2781 = vmatpush.bf16.msrb.mxu2 %v2752_v32 }
 0x24e   : > { %v2490_v7 = vld [vmem:[#allocation3] sm:$0xf] }
 0x24f   : > { %v2728_v9 = vld [vmem:[#allocation3 + $0x4] sm:$0xf] }
 0x250   : > { %1915 = vmatpush.bf16.msra.mxu1 %v2751_v35  ;;  %1899 = vmatpush.bf16.msrb.mxu3 %v2741_v43  ;;  %v2498_v13 = vld [vmem:[#allocation3 + $0x8] sm:$0xf] }
 0x251   : > { %2782 = vmatpush.bf16.msrb.mxu2 %v2751_v35 }
 0x254   : > { %1916 = vmatpush.bf16.msra.mxu1 %v2750_v39  ;;  %1900 = vmatpush.bf16.msrb.mxu3 %v2740_v46  ;;  %v2759_v46 = vld [vmem:[%s3397_s13 + $0x20] sm:$0xff] }
 0x255   : > { %2783 = vmatpush.bf16.msrb.mxu2 %v2750_v39 }
 0x258   : > { %1917 = vmatpush.bf16.msra.mxu1 %v2749_v44  ;;  %1901 = vmatpush.bf16.msrb.mxu3 %v2739_v52 }
 0x259   : > { %2784 = vmatpush.bf16.msrb.mxu2 %v2749_v44  ;;  %v2761_v44 = vld [vmem:[%s3397_s13 + $0x30] sm:$0xff] }
 0x25c   : > { %1918 = vmatpush.bf16.msra.mxu1 %v2748_v47 }
 0x25d   : > { %2785 = vmatpush.bf16.msrb.mxu2 %v2748_v47  ;;  %v2758_v47 = vld [vmem:[%s3397_s13 + $0x18] sm:$0xff] }
 0x260   : > { %1919 = vmatpush.bf16.msra.mxu1 %v2747_v55 }
 0x261   : > { %2786 = vmatpush.bf16.msrb.mxu2 %v2747_v55 }
 0x264   : > { %v1555_v48 = vpop.f32.mrf.mxu1 }
 0x265   : > { %v1577_v49 = vmul.f32 %v3191_v54, %v1555_v48  ;;  %v2757_v48 = vld [vmem:[%s3397_s13 + $0x10] sm:$0xff] }
 0x267   : > { %v1590_v56 = vadd.f32 %v3197_v57, %v1577_v49  ;;  %v2756_v49 = vld [vmem:[%s3397_s13 + $0x8] sm:$0xff] }
 0x269   : > { %v1599_v58 = vmax.f32 %v1590_v56, 0.0 }
 0x26b   : > { %v1608_v18 = vadd.f32 %v1599_v58, %v3100_v42 }
 0x26c   : > { %v1557_v19 = vpop.f32.mrf.mxu1 }
 0x26d   : > { %1617 = vst [vmem:[#allocation2 + $0x20] sm:$0xff] %v1608_v18  ;;  %v1578_v60 = vmul.f32 %v3191_v54, %v1557_v19  ;;  %v2803_v19 = vld [vmem:[%s3395_s11] ss:$0 sm:$0xff] }
 0x26f   : > { %v1591_v61 = vadd.f32 %v3197_v57, %v1578_v60 }
 0x271   : > { %v1600_v62 = vmax.f32 %v1591_v61, 0.0 }
 0x273   : > { %v1609_v63 = vadd.f32 %v1600_v62, %v3116_v11 }
 0x275   : > { %1618 = vst [vmem:[#allocation2 + $0x28] sm:$0xff] %v1609_v63  ;;  %v2804_v63 = vld [vmem:[%s3396_s12] ss:$0 sm:$0xff] }
 0x27c   : > { %v1624_v1 = vld [vmem:[#allocation2 + $0x18] ss:$3 sm:$0xff]  ;;  %v3294_v2 = vld [vmem:[#allocation2 + $0x19] ss:$3 sm:$0xff]  ;;  %v1643_v37 = vld [vmem:[#allocation2 + $0x1a] ss:$3 sm:$0xff] }
 0x27d   : > { %v1628_v42 = vpack.c.bf16 %v1624_v1, %v1624_v1  ;;  %v1637_v3 = vpack.c.bf16 %v3294_v2, %v3294_v2  ;;  %v1646_v5 = vpack.c.bf16 %v1643_v37, %v1643_v37 }
 0x27f   : > { %1631 = vst [vmem:[#allocation3 + $0xc] sm:$0xf] %v1628_v42 }
 0x280   : > { %1640 = vst [vmem:[#allocation3 + $0x10] sm:$0xf] %v1637_v3 }
 0x281   : > { %1649 = vst [vmem:[#allocation3 + $0x14] sm:$0xf] %v1646_v5 }
 0x284   : > { %v1560_v6 = vpop.f32.mrf.mxu1 }
 0x285   : > { %v1579_v11 = vmul.f32 %v3191_v54, %v1560_v6 }
 0x286   : > { %v2729_v41 = vld [vmem:[#allocation3 + $0x8] sm:$0xf0] }
 0x287   : > { %v1592_v8 = vadd.f32 %v3197_v57, %v1579_v11  ;;  %v2491_v0 = vor.u32 %v2729_v41, %v2490_v7  ;;  %v2492_v10 = vld [vmem:[#allocation3 + $0xc] sm:$0xf0] }
 0x288   : > { %v2495_v12 = vor.u32 %v2728_v9, %v2492_v10  ;;  %v2730_v14 = vld [vmem:[#allocation3 + $0x10] sm:$0xf0] }
 0x289   : > { %v1601_v23 = vmax.f32 %v1592_v8, 0.0  ;;  %1884 = vmatmul.bf16.vlgmr.msra.gmra.mxu2 %v2491_v0  ;;  %v2499_v15 = vor.u32 %v2730_v14, %v2498_v13 }
 0x28a   : > { %1902 = vmatmul.bf16.vlgmr.msrb.gmra.mxu3 %v2495_v12 }
 0x28b   : > { %v1610_v16 = vadd.f32 %v1601_v23, %v3139_v53  ;;  %1920 = vmatmul.bf16.vlgmr.msra.gmra.mxu1 %v2499_v15 }
 0x28c   : > { %v1562_v17 = vpop.f32.mrf.mxu1 }
 0x28d   : > { %1619 = vst [vmem:[#allocation2 + $0x30] sm:$0xff] %v1610_v16  ;;  %v1580_v21 = vmul.f32 %v3191_v54, %v1562_v17 }
 0x28f   : > { %v1593_v22 = vadd.f32 %v3197_v57, %v1580_v21 }
 0x291   : > { %v1602_v24 = vmax.f32 %v1593_v22, 0.0 }
 0x293   : > { %v1611_v25 = vadd.f32 %v1602_v24, %v3149_v59  ;;  %v2770_v24 = vld [vmem:[%s3400_s16 + $0x38] sm:$0xff] }
 0x294   : > { %v1565_v50 = vpop.f32.mrf.mxu1 }
 0x295   : > { %1620 = vst [vmem:[#allocation2 + $0x38] sm:$0xff] %v1611_v25  ;;  %v1581_v4 = vmul.f32 %v3191_v54, %v1565_v50  ;;  %v2762_v54 = vld [vmem:[%s3397_s13 + $0x38] sm:$0xff]  ;;  %v2769_v25 = vld [vmem:[%s3400_s16 + $0x30] sm:$0xff]  ;;  %v2768_v50 = vld [vmem:[%s3400_s16 + $0x28] sm:$0xff] }
 0x296   : > { %2013 = vmatpush.bf16.msra.mxu3 %v2762_v54 }
 0x297   : > { %v1594_v27 = vadd.f32 %v3197_v57, %v1581_v4  ;;  %v2051_v4 = vlaneseq }
 0x299   : > { %v1603_v28 = vmax.f32 %v1594_v27, 0.0 }
 0x29a   : > { %2014 = vmatpush.bf16.msra.mxu3 %v2761_v44 }
 0x29b   : > { %v1612_v29 = vadd.f32 %v1603_v28, %v3122_v26  ;;  %v2767_v28 = vld [vmem:[%s3400_s16 + $0x20] sm:$0xff] }
 0x29c   : > { %v1567_v53 = vpop.f32.mrf.mxu1 }
 0x29d   : > { %1621 = vst [vmem:[#allocation2 + $0x40] sm:$0xff] %v1612_v29  ;;  %v2054_v29 = vshrl.u32 %v2051_v4, 7  ;;  %v2805_v53 = vld [vmem:[%s3398_s14] ss:$0 sm:$0xff] }
 0x29e   : > { %2015 = vmatpush.bf16.msra.mxu3 %v2760_v45 }
 0x2a2   : > { %2016 = vmatpush.bf16.msra.mxu3 %v2759_v46 }
 0x2a4   : > { %v1626_v30 = vld [vmem:[#allocation2 + $0x30] ss:$3 sm:$0xff]  ;;  %v3307_v31 = vld [vmem:[#allocation2 + $0x31] ss:$3 sm:$0xff]  ;;  %v1644_v32 = vld [vmem:[#allocation2 + $0x32] ss:$3 sm:$0xff] }
 0x2a5   : > { %v1629_v33 = vpack.c.bf16 %v1626_v30, %v1626_v30  ;;  %v1638_v34 = vpack.c.bf16 %v3307_v31, %v3307_v31  ;;  %v1647_v59 = vpack.c.bf16 %v1644_v32, %v1644_v32  ;;  %v2766_v30 = vld [vmem:[%s3400_s16 + $0x18] sm:$0xff] }
 0x2a6   : > { %2017 = vmatpush.bf16.msra.mxu3 %v2758_v47 }
 0x2a7   : > { %1632 = vst [vmem:[#allocation3 + $0x18] sm:$0xf] %v1629_v33  ;;  %v2055_v33 = vmul.u32 3, %v2054_v29 }
 0x2a8   : > { %1641 = vst [vmem:[#allocation3 + $0x1c] sm:$0xf] %v1638_v34 }
 0x2a9   : > { %1650 = vst [vmem:[#allocation3 + $0x20] sm:$0xf] %v1647_v59  ;;  %v2806_v59 = vld [vmem:[%s3399_s15] ss:$0 sm:$0xff] }
 0x2aa   : > { %2018 = vmatpush.bf16.msra.mxu3 %v2757_v48 }
 0x2ae   : > { %2019 = vmatpush.bf16.msra.mxu3 %v2756_v49 }
 0x2af   : > { %v1655_v26 = vld [vmem:[#allocation3 + $0x18] sm:$0xff] }
 0x2b0   : > { %v1717_v57 = vunpack.c.l.b16 %v1655_v26  ;;  %v1718_v35 = vunpack.c.h.b16 %v1655_v26  ;;  %v1656_v39 = vld [vmem:[#allocation3 + $0x20] sm:$0xf]  ;;  %v2765_v26 = vld [vmem:[%s3400_s16 + $0x10] sm:$0xff] }
 0x2b1   : > { %v1719_v40 = vunpack.c.l.b16 %v1656_v39 }
 0x2b2   : > { %v1723_v36 = vpack.c.b16 %v1717_v57, %v1717_v57  ;;  %v1724_v38 = vpack.c.b16 %v1718_v35, %v1718_v35  ;;  %2020 = vmatpush.bf16.msra.mxu3 %v2755_v51 }
 0x2b3   : > { %v1725_v43 = vpack.c.b16 %v1719_v40, %v1719_v40 }
 0x2b4   : > { %1889 = vmatmul.bf16.gmra.mxu2 %v1723_v36  ;;  %1907 = vmatmul.bf16.gmra.mxu3 %v1724_v38  ;;  %v2052_v36 = vand.u32 127, %v2051_v4  ;;  %v2057_v38 = vadd.s32 3, %v2055_v33 }
 0x2b6   : > { %2154 = vmatpush.bf16.msrb.mxu3 %v2770_v24  ;;  %vm2056_vm0 = vcmp.ge.s32.totalorder %v2052_v36, %v2055_v33  ;;  %vm2058_vm1 = vcmp.lt.s32.totalorder %v2052_v36, %v2057_v38 }
 0x2b7   : > { %vm2059_vm2 = vmand %vm2056_vm0, %vm2058_vm1 }
 0x2ba   : > { %2155 = vmatpush.bf16.msrb.mxu3 %v2769_v25 }
 0x2be   : > { %2156 = vmatpush.bf16.msrb.mxu3 %v2768_v50 }
 0x2c2   : > { %2157 = vmatpush.bf16.msrb.mxu3 %v2767_v28 }
 0x2c4   : > { %1925 = vmatmul.bf16.vlgmr.msrb.gmra.mxu2 %v1725_v43  ;;  %v2764_v43 = vld [vmem:[%s3400_s16 + $0x8] sm:$0xff] }
 0x2c6   : > { %2158 = vmatpush.bf16.msrb.mxu3 %v2766_v30 }
 0x2ca   : > { %2159 = vmatpush.bf16.msrb.mxu3 %v2765_v26 }
 0x2ce   : > { %2160 = vmatpush.bf16.msrb.mxu3 %v2764_v43 }
 0x308   : > { %v1921_v55 = vpop.f32.mrf.mxu1 }
 0x30c   : > { %v1885_v52 = vpop.f32.mrf.mxu2 }
 0x30d   : > { %v1903_v56 = vpop.f32.mrf.mxu3 }
 0x30e   : > { %v1904_v58 = vadd.f32 %v1903_v56, %v1885_v52  ;;  %v2816_v52 = vmov 0.0   ;;  %v2763_v56 = vld [vmem:[%s3400_s16] sm:$0xff] }
 0x30f   : > { %2161 = vmatpush.bf16.msrb.mxu3 %v2763_v56 }
 0x310   : > { %v1922_v18 = vadd.f32 %v1921_v55, %v1904_v58  ;;  %v1923_v37 = vpop.f32.mrf.mxu1  ;;  %v2060_v55 = vsel %vm2059_vm2, 0.33333334, %v2816_v52 }
 0x312   : > { %v1934_v62 = vmul.f32 %v2803_v19, %v1922_v18 }
 0x314   : > { %v1887_v60 = vpop.f32.mrf.mxu2  ;;  %v1941_v3 = vadd.f32 %v2804_v63, %v1934_v62 }
 0x315   : > { %v1905_v61 = vpop.f32.mrf.mxu3 }
 0x316   : > { %v1906_v1 = vadd.f32 %v1905_v61, %v1887_v60  ;;  %v1944_v11 = vmax.f32 %v1941_v3, 0.0 }
 0x318   : > { %v1924_v42 = vadd.f32 %v1923_v37, %v1906_v1 }
 0x31a   : > { %v1935_v5 = vmul.f32 %v2803_v19, %v1924_v42 }
 0x31c   : > { %v1942_v6 = vadd.f32 %v2804_v63, %v1935_v5 }
 0x31e   : > { %v1945_v7 = vmax.f32 %v1942_v6, 0.0 }
 0x320   : > { %v1947_v41 = vpack.c.bf16 %v1945_v7, %v1944_v11 }
 0x322   : > { %2021 = vmatmul.bf16.vlgmr.msra.gmra.mxu3 %v1947_v41 }
 0x337   : > { %v1890_v8 = vpop.f32.mrf.mxu2  ;;  %v1908_v0 = vpop.f32.mrf.mxu3 }
 0x338   : > { %v1909_v12 = vadd.f32 %v1908_v0, %v1890_v8 }
 0x33f   : > { %v1892_v9 = vpop.f32.mrf.mxu2  ;;  %v1910_v10 = vpop.f32.mrf.mxu3 }
 0x347   : > { %v1926_v13 = vpop.f32.mrf.mxu2 }
 0x348   : > { %v1927_v14 = vadd.f32 %v1926_v13, %v1909_v12 }
 0x34a   : > { %v1936_v23 = vmul.f32 %v2803_v19, %v1927_v14 }
 0x34c   : > { %v1943_v15 = vadd.f32 %v2804_v63, %v1936_v23 }
 0x34e   : > { %v1946_v16 = vmax.f32 %v1943_v15, 0.0 }
 0x34f   : > { %v1928_v17 = vpop.f32.mrf.mxu2 }
 0x350   : > { %v1948_v21 = vpack.c.bf16 %v1946_v16, %v1946_v16 }
 0x352   : > { %2026 = vmatmul.bf16.gmra.mxu3 %v1948_v21 }
 0x3a5   : > { %v2022_v22 = vpop.f32.mrf.mxu3 }
 0x3a6   : > { %v2035_v34 = vmul.f32 %v2805_v53, %v2022_v22 }
 0x3a8   : > { %v2042_v39 = vadd.f32 %v2806_v59, %v2035_v34 }
 0x3aa   : > { %v2045_v46 = vmax.f32 %v2042_v39, 0.0 }
 0x3ac   : > { %v2048_v51 = vadd.f32 %v2045_v46, %v3215_v20 }
 0x3ad   : > { %v2024_v27 = vpop.f32.mrf.mxu3 }
 0x3ae   : > { %v2036_v32 = vmul.f32 %v2805_v53, %v2024_v27 }
 0x3b0   : > { %v2043_v57 = vadd.f32 %v2806_v59, %v2036_v32 }
 0x3b2   : > { %v2046_v44 = vmax.f32 %v2043_v57, 0.0 }
 0x3b4   : > { %v2049_v49 = vadd.f32 %v2046_v44, %v3294_v2  ;;  %v2807_v2 = vld [vmem:[%s3401_s17] ss:$0 sm:$0xff] }
 0x3d5   : > { %v2027_v54 = vpop.f32.mrf.mxu3 }
 0x3d6   : > { %v2037_v35 = vmul.f32 %v2805_v53, %v2027_v54 }
 0x3d8   : > { %v2044_v40 = vadd.f32 %v2806_v59, %v2037_v35 }
 0x3da   : > { %v2047_v45 = vmax.f32 %v2044_v40, 0.0 }
 0x3dc   : > { %v2050_v47 = vadd.f32 %v2047_v45, %v3307_v31 }
 0x3dd   : > { %v2029_v48 = vpop.f32.mrf.mxu3 }
 0x3de   : > { %2078 = vmatpush.msra.mxu2 %v2050_v47 }
 0x3e0   : > { %2079 = vmatpush.msra.mxu2 %v2049_v49 }
 0x3e2   : > { %2080 = vmatpush.msra.mxu2 %v2048_v51 }
 0x3e3   : > { %2628 = vmatmul.msk.f32.vlgmr.msra.gmra.mxu2 %vm2061_vm3, %v2060_v55 }
 0x466   : > { %v2082_v31 = vpop.f32.mrf.mxu2 }
 0x467   : > { %v2085_v58 = vpack.c.bf16 %v2082_v31, %v2082_v31 }
 0x469   : > { %2162 = vmatmul.bf16.vlgmr.msrb.gmra.mxu3 %v2085_v58 }
 0x4ec   : > { %v2163_v20 = vpop.f32.mrf.mxu3 }
 0x4ed   : > { %v2164_v18 = vadd.f32 %v2807_v2, %v2163_v20 }
 0x4ef   : > { %2167 = vst [vmem:[%s573_s1] sm:$0xff] %v2164_v18 }
 0x4f4   : > { %v2165_v19 = vpop.f32.mrf.mxu3 }
 0x4f5 PF: > { %s28_s27 = sadd.s32 1, %s2814_s27  }
 0x4f6   : > { %p25_p4 = scmp.ge.s32.totalorder %s28_s27, 4  }
 0x4f8   :  { %27 = sbr.rel (!%p25_p4) target bundleno = 4 (0x4), region = 150 }

</bundles_post_ra>
